<compile_context>
chip_gen: v6e
topology: v6e:2x2x1
jax: 0.10.0
libtpu: 0.0.40
codegen_flags: <defaults>
</compile_context>

<pallas_src>
import functools

import jax
import jax.numpy as jnp
from jax.experimental import pallas as pl
from jax.experimental.pallas import tpu as pltpu

LN_EPS = 1e-5
LANE = 128
_STEP_OVERHEAD_FLOPS = 4.0e5  # ~0.35us of grid-step overhead expressed as "work"


# ----------------------------------------------------------------------------- hardware probes
def _tpu_info():
    try:
        return pltpu.get_tpu_info()
    except Exception:
        return None


def _vmem_budget_bytes():
    """~85% of per-core VMEM capacity (headroom for Mosaic internal scratch / semaphores)."""
    cap = 64 << 20
    info = _tpu_info()
    if info is not None:
        cap = int(getattr(info, "vmem_capacity_bytes", 0) or cap)
    return (cap * 85) // 100


def _num_tensorcores():
    info = _tpu_info()
    if info is not None:
        for attr in ("num_tensorcores", "tensorcore_count", "num_cores", "core_count"):
            v = getattr(info, attr, None)
            if isinstance(v, int) and 0 < v <= 8:
                return v
    try:
        if "v7" in jax.devices()[0].device_kind.lower():
            return 2
    except Exception:
        pass
    return 1


def _has_bf16_vpu():
    """v5e and older have no bf16 VALU/EUP path; v6e/v7x do."""
    try:
        kind = jax.devices()[0].device_kind.lower()
    except Exception:
        return False
    return not any(t in kind for t in ("v2", "v3", "v4", "v5"))


# ----------------------------------------------------------------------------- in-kernel math
def _layer_norm(h, gamma, beta):
    # Folded affine (perf review): y = h*scale + shift,
    #   scale = gamma * rsqrt(var + eps),  shift = beta - mu*scale.
    mu = jnp.mean(h, axis=-1, keepdims=True)
    var = jnp.mean((h - mu) ** 2, axis=-1, keepdims=True)
    scale = gamma * jax.lax.rsqrt(var + LN_EPS)
    return h * scale + (beta - mu * scale)


def _silu(h):
    return h * jax.nn.sigmoid(h)


# ----------------------------------------------------------------------------- resident kernel
def _resident_kernel(
    x_ref,
    g0_ref, b0_ref,
    w1_ref, bb1_ref, g1_ref, bln1_ref,
    w2_ref, bb2_ref, g2_ref, bln2_ref,
    w3_ref, bb3_ref, g3_ref, bln3_ref,
    w4_ref, bb4_ref,
    o_ref,
    *, act_dtype,
):
    """Whole MLP chain fused; all weights resident (single-buffered) in VMEM."""
    mm_dtype = w1_ref.dtype  # bf16 on the MXU-optimized path, f32 on the exact-check path

    def ln_silu(h, g, b):
        # LN statistics in f32; the elementwise tail runs in act_dtype (bf16 on v6e/v7x).
        return _silu(_layer_norm(h, g, b).astype(act_dtype))

    h = x_ref[...].astype(jnp.float32)
    h = _layer_norm(h, g0_ref[...], b0_ref[...])                                  # layer_norm0
    h = jnp.dot(h.astype(mm_dtype), w1_ref[...],
                preferred_element_type=jnp.float32) + bb1_ref[...]                # fc1
    h = ln_silu(h, g1_ref[...], bln1_ref[...])                                    # ln1 + SiLU
    h = jnp.dot(h.astype(mm_dtype), w2_ref[...],
                preferred_element_type=jnp.float32) + bb2_ref[...]                # fc2
    h = ln_silu(h, g2_ref[...], bln2_ref[...])                                    # ln2 + SiLU
    h = jnp.dot(h.astype(mm_dtype), w3_ref[...],
                preferred_element_type=jnp.float32) + bb3_ref[...]                # fc3
    h = ln_silu(h, g3_ref[...], bln3_ref[...])                                    # ln3 + SiLU
    h = jnp.dot(h.astype(mm_dtype), w4_ref[...],
                preferred_element_type=jnp.float32) + bb4_ref[...]                # fc4
    o_ref[...] = h.astype(o_ref.dtype)


# ----------------------------------------------------------------------------- streaming kernel
def _stream_matmul(h_mm, w_hbm, bias_ref, out_ref, w_buf, sem):
    """out_ref[:, :N] = h_mm @ w_hbm + bias, streaming (K, tn) column strips of the HBM weight
    through a double-buffered VMEM scratch.  The N-tile loop is statically unrolled so every
    slot / offset is a compile-time constant."""
    n_dim = w_hbm.shape[1]
    tn = w_buf.shape[2]
    n_steps = n_dim // tn

    def issue(step, slot):
        pltpu.make_async_copy(w_hbm.at[:, pl.ds(step * tn, tn)],
                              w_buf.at[slot], sem.at[slot]).start()

    issue(0, 0)
    for step in range(n_steps):
        slot = step % 2
        pltpu.make_async_copy(w_hbm.at[:, pl.ds(step * tn, tn)],
                              w_buf.at[slot], sem.at[slot]).wait()
        if step + 1 < n_steps:
            issue(step + 1, 1 - slot)                       # prefetch next strip
        acc = jnp.dot(h_mm, w_buf[slot], preferred_element_type=jnp.float32)
        out_ref[:, step * tn:(step + 1) * tn] = (
            acc + bias_ref[:, step * tn:(step + 1) * tn]).astype(out_ref.dtype)


def _streaming_kernel(
    x_ref,
    g0_ref, b0_ref,
    bb1_ref, g1_ref, bln1_ref,
    bb2_ref, g2_ref, bln2_ref,
    bb3_ref, g3_ref, bln3_ref,
    bb4_ref,
    w1_hbm, w2_hbm, w3_hbm, w4_hbm,
    o_ref,
    y_scr, w1_buf, w2_buf, w3_buf, w4_buf, sem,
    *, act_dtype,
):
    """Large-hidden fallback: Linear weights stay in HBM and are streamed in column tiles."""
    mm_dtype = w1_hbm.dtype
    hid = w1_hbm.shape[1]
    hid2 = w3_hbm.shape[1]

    def ln_silu(h, g, b):
        return _silu(_layer_norm(h, g, b).astype(act_dtype)).astype(mm_dtype)

    h = _layer_norm(x_ref[...].astype(jnp.float32), g0_ref[...], b0_ref[...])     # layer_norm0
    h = h.astype(mm_dtype)

    _stream_matmul(h, w1_hbm, bb1_ref, y_scr, w1_buf, sem)                        # fc1
    h = ln_silu(y_scr[:, :hid], g1_ref[...], bln1_ref[...])
    _stream_matmul(h, w2_hbm, bb2_ref, y_scr, w2_buf, sem)                        # fc2
    h = ln_silu(y_scr[:, :hid], g2_ref[...], bln2_ref[...])
    _stream_matmul(h, w3_hbm, bb3_ref, y_scr, w3_buf, sem)                        # fc3
    h = ln_silu(y_scr[:, :hid2], g3_ref[...], bln3_ref[...])
    _stream_matmul(h, w4_hbm, bb4_ref, o_ref, w4_buf, sem)                        # fc4 -> out


# ----------------------------------------------------------------------------- wrapper
def _round_up(n, m):
    return ((n + m - 1) // m) * m


def _pick_tn(n, max_tn):
    """Largest multiple of 128 that divides n and is <= max_tn."""
    best = LANE
    t = LANE
    while t <= min(max_tn, n):
        if n % t == 0:
            best = t
        t += LANE
    return best


def _pick_tile_m(batch, n_cores, per_row_flops):
    if batch <= 8:
        return batch
    if n_cores >= 2:
        # Two TensorCores (v7x): want >=2 "parallel" grid steps, as long as each step still
        # amortizes the ~0.35us per-step grid overhead.
        for t in (256, 128, 64, 32, 16, 8):
            if batch % t == 0 and batch // t >= 2 and per_row_flops * t >= _STEP_OVERHEAD_FLOPS:
                return t
        if batch % 16 == 0 and per_row_flops * (batch // 2) >= _STEP_OVERHEAD_FLOPS:
            return batch // 2
        return batch
    # Single TensorCore (v5e/v6e): the grid is a serial loop -> fewest, largest tiles.
    if batch <= 1024:
        return batch
    for t in (1024, 512, 256, 128, 64, 32, 16, 8):
        if batch % t == 0:
            return t
    return batch


def mlp_encoder_forward(x, params, *, tile_m=None, force_streaming=False, max_tn=128):
    """x: (B, input_size). Returns (1, B, output_size), matching the torch reshape."""
    batch, in_dim = x.shape
    hidden = params["w1"].shape[1]
    hidden2 = params["w3"].shape[1]
    out_dim = params["w4"].shape[1]

    w_dtypes = {params[k].dtype for k in ("w1", "w2", "w3", "w4")}
    assert len(w_dtypes) == 1, f"all Linear weights must share one dtype, got {w_dtypes}"
    mm_dtype = params["w1"].dtype
    act_dtype = jnp.bfloat16 if (mm_dtype == jnp.bfloat16 and _has_bf16_vpu()) else jnp.float32

    itemsize = jnp.dtype(x.dtype).itemsize
    budget = _vmem_budget_bytes()
    n_cores = _num_tensorcores()

    per_row_flops = 2.0 * (in_dim * hidden + hidden * hidden
                           + hidden * hidden2 + hidden2 * out_dim)
    if tile_m is None:
        tile_m = _pick_tile_m(batch, n_cores, per_row_flops)
    if batch % tile_m != 0:
        tile_m = batch

    param_bytes = sum(int(params[k].size) * jnp.dtype(params[k].dtype).itemsize for k in params)
    widest = max(hidden2, hidden, in_dim, out_dim)

    def resident_fits(tm):
        est = (param_bytes                                            # single-buffered params
               + 3 * tm * widest * 4                                  # live f32 activations
               + 2 * tm * (in_dim + _round_up(out_dim, LANE)) * itemsize)  # x/out double buffers
        return est <= budget

    use_streaming = force_streaming or not resident_fits(tile_m)
    if use_streaming and hidden % LANE != 0:
        use_streaming = False                 # streaming needs 128-aligned hidden widths
    if not use_streaming:
        while tile_m > 8 and not resident_fits(tile_m) and batch % (tile_m // 2) == 0:
            tile_m //= 2

    grid = (batch // tile_m,)
    dim_sem = ("parallel",)

    flops = int(per_row_flops * batch
                + 10 * batch * (in_dim + 2 * hidden + 2 * hidden2 + out_dim))
    transcendentals = int(batch * (2 * hidden + hidden2))
    bytes_accessed = int(x.size) * itemsize + batch * out_dim * itemsize + param_bytes
    cost = pl.CostEstimate(flops=flops, transcendentals=transcendentals,
                           bytes_accessed=int(bytes_accessed))

    def param_spec(p, single_buffer):
        nd = p.ndim
        if single_buffer:
            # Constant index map -> fetched once; single-buffering halves the param VMEM.
            return pl.BlockSpec(p.shape, lambda i, _n=nd: (0,) * _n,
                                pipeline_mode=pl.Buffered(1))
        return pl.BlockSpec(p.shape, lambda i, _n=nd: (0,) * _n)

    if not use_streaming:
        # Lane-dense output only when it costs < 2x writeback; tiny widths keep the true
        # (masked-store) width to avoid up-to-8x HBM writeback inflation.
        if out_dim % LANE == 0 or out_dim < LANE:
            out_w, w4, bb4 = out_dim, params["w4"], params["bb4"]
        else:
            out_w = _round_up(out_dim, LANE)
            w4 = jnp.pad(params["w4"], ((0, 0), (0, out_w - out_dim)))
            bb4 = jnp.pad(params["bb4"], ((0, 0), (0, out_w - out_dim)))

        param_list = [
            params["g0"], params["b0"],
            params["w1"], params["bb1"], params["g1"], params["bln1"],
            params["w2"], params["bb2"], params["g2"], params["bln2"],
            params["w3"], params["bb3"], params["g3"], params["bln3"],
            w4, bb4,
        ]
        est = (param_bytes + 3 * tile_m * widest * 4
               + 2 * tile_m * (in_dim + out_w) * itemsize)
        vmem_limit = int(min(max(2 * est, 32 << 20), budget))

        def call(single_buffer):
            in_specs = [pl.BlockSpec((tile_m, in_dim), lambda i: (i, 0))]
            in_specs += [param_spec(p, single_buffer) for p in param_list]
            return pl.pallas_call(
                functools.partial(_resident_kernel, act_dtype=act_dtype),
                out_shape=jax.ShapeDtypeStruct((batch, out_w), x.dtype),
                grid_spec=pltpu.PrefetchScalarGridSpec(
                    num_scalar_prefetch=0,
                    grid=grid,
                    in_specs=in_specs,
                    out_specs=pl.BlockSpec((tile_m, out_w), lambda i: (i, 0)),
                ),
                compiler_params=pltpu.CompilerParams(
                    dimension_semantics=dim_sem,
                    vmem_limit_bytes=vmem_limit,
                ),
                cost_estimate=cost,
            )(x, *param_list)

        try:
            out2d = call(True)
        except Exception:
            # This jax build rejects pl.Buffered(1) on pallas_call BlockSpecs; fall back to the
            # default double-buffered parameter specs (identical results, 2x param VMEM).
            out2d = call(False)

    else:
        out_w = _round_up(out_dim, LANE)      # the column-tile loop needs 128-aligned output
        if out_w != out_dim:
            w4 = jnp.pad(params["w4"], ((0, 0), (0, out_w - out_dim)))
            bb4 = jnp.pad(params["bb4"], ((0, 0), (0, out_w - out_dim)))
        else:
            w4, bb4 = params["w4"], params["bb4"]

        small_params = [
            params["g0"], params["b0"],
            params["bb1"], params["g1"], params["bln1"],
            params["bb2"], params["g2"], params["bln2"],
            params["bb3"], params["g3"], params["bln3"],
            bb4,
        ]
        weights = [params["w1"], params["w2"], params["w3"], w4]
        tns = [_pick_tn(hidden, max_tn), _pick_tn(hidden, max_tn),
               _pick_tn(hidden2, max_tn), _pick_tn(out_w, max_tn)]

        scratch = [pltpu.VMEM((tile_m, max(hidden2, hidden)), jnp.float32)]
        for w, tn in zip(weights, tns):
            scratch.append(pltpu.VMEM((2, w.shape[0], tn), mm_dtype))
        scratch.append(pltpu.SemaphoreType.DMA((2,)))

        small_bytes = sum(int(p.size) * jnp.dtype(p.dtype).itemsize for p in small_params)
        buf_bytes = sum(2 * w.shape[0] * tn * jnp.dtype(mm_dtype).itemsize
                        for w, tn in zip(weights, tns))
        est = (small_bytes + buf_bytes + tile_m * max(hidden2, hidden) * 4
               + 2 * tile_m * hidden2 * 4
               + 2 * tile_m * (in_dim + out_w) * itemsize)
        vmem_limit = int(min(max(2 * est, 32 << 20), budget))

        def call(single_buffer):
            in_specs = [pl.BlockSpec((tile_m, in_dim), lambda i: (i, 0))]
            in_specs += [param_spec(p, single_buffer) for p in small_params]
            in_specs += [pl.BlockSpec(memory_space=pl.ANY)] * 4
            return pl.pallas_call(
                functools.partial(_streaming_kernel, act_dtype=act_dtype),
                out_shape=jax.ShapeDtypeStruct((batch, out_w), x.dtype),
                grid_spec=pltpu.PrefetchScalarGridSpec(
                    num_scalar_prefetch=0,
                    grid=grid,
                    in_specs=in_specs,
                    out_specs=pl.BlockSpec((tile_m, out_w), lambda i: (i, 0)),
                    scratch_shapes=scratch,
                ),
                compiler_params=pltpu.CompilerParams(
                    dimension_semantics=dim_sem,
                    vmem_limit_bytes=vmem_limit,
                ),
                cost_estimate=cost,
            )(x, *small_params, *weights)

        try:
            out2d = call(True)
        except Exception:
            out2d = call(False)

    out2d = out2d[:, :out_dim]
    # torch: reshape(output, (-1, output.shape[0], output.shape[1])) -> (1, B, out_dim)
    return jnp.reshape(out2d, (-1, batch, out_dim))


# ----------------------------------------------------------------------------- params / reference
def init_params(key, input_size, hidden_size, output_size,
                dtype=jnp.float32, weight_dtype=jnp.bfloat16):
    """Deterministic synthetic init. Linear weights stored pre-transposed as (in, out) in
    `weight_dtype` (bf16 by default -> MXU-friendly operands, half the HBM/VMEM footprint)."""
    ks = jax.random.split(key, 4)

    def lin(k, fan_in, fan_out):
        kw, kb = jax.random.split(k)
        bound = 1.0 / jnp.sqrt(fan_in)
        w = jax.random.uniform(kw, (fan_in, fan_out), dtype, -bound, bound).astype(weight_dtype)
        b = jax.random.uniform(kb, (1, fan_out), dtype, -bound, bound)
        return w, b

    w1, bb1 = lin(ks[0], input_size, hidden_size)
    w2, bb2 = lin(ks[1], hidden_size, hidden_size)
    w3, bb3 = lin(ks[2], hidden_size, hidden_size * 2)
    w4, bb4 = lin(ks[3], hidden_size * 2, output_size)

    return {
        "g0": jnp.ones((1, input_size), dtype), "b0": jnp.zeros((1, input_size), dtype),
        "w1": w1, "bb1": bb1,
        "g1": jnp.ones((1, hidden_size), dtype), "bln1": jnp.zeros((1, hidden_size), dtype),
        "w2": w2, "bb2": bb2,
        "g2": jnp.ones((1, hidden_size), dtype), "bln2": jnp.zeros((1, hidden_size), dtype),
        "w3": w3, "bb3": bb3,
        "g3": jnp.ones((1, hidden_size * 2), dtype), "bln3": jnp.zeros((1, hidden_size * 2), dtype),
        "w4": w4, "bb4": bb4,
    }


def _reference(x, p):
    """Pure-JAX f32 reference mirroring the PyTorch forward (weights upcast to f32)."""
    f32 = lambda a: a.astype(jnp.float32)

    def ln(h, g, b):
        mu = jnp.mean(h, axis=-1, keepdims=True)
        var = jnp.mean((h - mu) ** 2, axis=-1, keepdims=True)
        return (h - mu) * jax.lax.rsqrt(var + LN_EPS) * g + b

    silu = lambda h: h * jax.nn.sigmoid(h)
    h = ln(f32(x), p["g0"], p["b0"])
    h = silu(ln(h @ f32(p["w1"]) + p["bb1"], p["g1"], p["bln1"]))
    h = silu(ln(h @ f32(p["w2"]) + p["bb2"], p["g2"], p["bln2"]))
    h = silu(ln(h @ f32(p["w3"]) + p["bb3"], p["g3"], p["bln3"]))
    h = h @ f32(p["w4"]) + p["bb4"]
    return jnp.reshape(h, (-1, x.shape[0], h.shape[1]))


if __name__ == "__main__":
    # ---- resident-weight fast path (small module sizes) --------------------------------------
    B, INPUT, HIDDEN, OUTPUT = 16, 32, 32, 16
    key = jax.random.PRNGKey(0)
    kx, kp = jax.random.split(key)
    x = jax.random.normal(kx, (B, INPUT), jnp.float32)

    params_bf16 = init_params(kp, INPUT, HIDDEN, OUTPUT, weight_dtype=jnp.bfloat16)
    out = jax.block_until_ready(mlp_encoder_forward(x, params_bf16))
    ref = _reference(x, params_bf16)
    assert out.shape == (1, B, OUTPUT), out.shape
    assert jnp.allclose(out, ref, atol=5e-2, rtol=5e-2), float(jnp.max(jnp.abs(out - ref)))

    # f32-weight exact-path check (same kernel, f32 MXU operands / f32 elementwise).
    params_f32 = init_params(kp, INPUT, HIDDEN, OUTPUT, weight_dtype=jnp.float32)
    out32 = jax.block_until_ready(mlp_encoder_forward(x, params_f32))
    ref32 = _reference(x, params_f32)
    assert jnp.allclose(out32, ref32, atol=2e-4, rtol=2e-4), float(jnp.max(jnp.abs(out32 - ref32)))

    # ---- HBM-streamed fallback path (large-hidden design), exercised at a small aligned size --
    B2, IN2, HID2, OUT2 = 64, 128, 256, 64
    x2 = jax.random.normal(jax.random.PRNGKey(1), (B2, IN2), jnp.float32)
    p2 = init_params(jax.random.PRNGKey(2), IN2, HID2, OUT2, weight_dtype=jnp.bfloat16)
    out2 = jax.block_until_ready(
        mlp_encoder_forward(x2, p2, force_streaming=True, max_tn=128))
    ref2 = _reference(x2, p2)
    assert out2.shape == (1, B2, OUT2), out2.shape
    assert jnp.allclose(out2, ref2, atol=5e-2, rtol=5e-2), float(jnp.max(jnp.abs(out2 - ref2)))

    print("KERNEL_OK")
</pallas_src>

<mosaic_0001>
module attributes {stable_mosaic.version = 11 : i64} {
  func.func @_resident_kernel(%arg0: i32, %arg1: memref<16x32xf32, #tpu.memory_space<vmem>>, %arg2: memref<1x32xf32, #tpu.memory_space<vmem>>, %arg3: memref<1x32xf32, #tpu.memory_space<vmem>>, %arg4: memref<32x32xbf16, #tpu.memory_space<vmem>>, %arg5: memref<1x32xf32, #tpu.memory_space<vmem>>, %arg6: memref<1x32xf32, #tpu.memory_space<vmem>>, %arg7: memref<1x32xf32, #tpu.memory_space<vmem>>, %arg8: memref<32x32xbf16, #tpu.memory_space<vmem>>, %arg9: memref<1x32xf32, #tpu.memory_space<vmem>>, %arg10: memref<1x32xf32, #tpu.memory_space<vmem>>, %arg11: memref<1x32xf32, #tpu.memory_space<vmem>>, %arg12: memref<32x64xbf16, #tpu.memory_space<vmem>>, %arg13: memref<1x64xf32, #tpu.memory_space<vmem>>, %arg14: memref<1x64xf32, #tpu.memory_space<vmem>>, %arg15: memref<1x64xf32, #tpu.memory_space<vmem>>, %arg16: memref<64x16xbf16, #tpu.memory_space<vmem>>, %arg17: memref<1x16xf32, #tpu.memory_space<vmem>>, %arg18: memref<16x16xf32, #tpu.memory_space<vmem>>) attributes {dimension_semantics = [#tpu.dimension_semantics<parallel>], iteration_bounds = array<i64: 1>, scalar_prefetch = 0 : i64, scratch_operands = 0 : i64, tpu.core_type = #tpu.core_type<tc>, window_params = [{transform_indices = @transform_0, window_bounds = array<i64: 16, 32>}, {pipeline_mode = #tpu.pipeline_mode<synchronous>, transform_indices = @transform_1, window_bounds = array<i64: 1, 32>}, {pipeline_mode = #tpu.pipeline_mode<synchronous>, transform_indices = @transform_2, window_bounds = array<i64: 1, 32>}, {pipeline_mode = #tpu.pipeline_mode<synchronous>, transform_indices = @transform_3, window_bounds = array<i64: 32, 32>}, {pipeline_mode = #tpu.pipeline_mode<synchronous>, transform_indices = @transform_4, window_bounds = array<i64: 1, 32>}, {pipeline_mode = #tpu.pipeline_mode<synchronous>, transform_indices = @transform_5, window_bounds = array<i64: 1, 32>}, {pipeline_mode = #tpu.pipeline_mode<synchronous>, transform_indices = @transform_6, window_bounds = array<i64: 1, 32>}, {pipeline_mode = #tpu.pipeline_mode<synchronous>, transform_indices = @transform_7, window_bounds = array<i64: 32, 32>}, {pipeline_mode = #tpu.pipeline_mode<synchronous>, transform_indices = @transform_8, window_bounds = array<i64: 1, 32>}, {pipeline_mode = #tpu.pipeline_mode<synchronous>, transform_indices = @transform_9, window_bounds = array<i64: 1, 32>}, {pipeline_mode = #tpu.pipeline_mode<synchronous>, transform_indices = @transform_10, window_bounds = array<i64: 1, 32>}, {pipeline_mode = #tpu.pipeline_mode<synchronous>, transform_indices = @transform_11, window_bounds = array<i64: 32, 64>}, {pipeline_mode = #tpu.pipeline_mode<synchronous>, transform_indices = @transform_12, window_bounds = array<i64: 1, 64>}, {pipeline_mode = #tpu.pipeline_mode<synchronous>, transform_indices = @transform_13, window_bounds = array<i64: 1, 64>}, {pipeline_mode = #tpu.pipeline_mode<synchronous>, transform_indices = @transform_14, window_bounds = array<i64: 1, 64>}, {pipeline_mode = #tpu.pipeline_mode<synchronous>, transform_indices = @transform_15, window_bounds = array<i64: 64, 16>}, {pipeline_mode = #tpu.pipeline_mode<synchronous>, transform_indices = @transform_16, window_bounds = array<i64: 1, 16>}, {transform_indices = @transform_17, window_bounds = array<i64: 16, 16>}]} {
    %c0 = arith.constant 0 : index
    %c0_0 = arith.constant 0 : index
    %0 = vector.load %arg1[%c0, %c0_0] : memref<16x32xf32, #tpu.memory_space<vmem>>, vector<16x32xf32>
    %c0_1 = arith.constant 0 : index
    %c0_2 = arith.constant 0 : index
    %1 = vector.load %arg2[%c0_1, %c0_2] : memref<1x32xf32, #tpu.memory_space<vmem>>, vector<1x32xf32>
    %c0_3 = arith.constant 0 : index
    %c0_4 = arith.constant 0 : index
    %2 = vector.load %arg3[%c0_3, %c0_4] : memref<1x32xf32, #tpu.memory_space<vmem>>, vector<1x32xf32>
    %cst = arith.constant dense<0.000000e+00> : vector<16xf32>
    %3 = vector.multi_reduction <add>, %0, %cst [1] : vector<16x32xf32> to vector<16xf32>
    %4 = vector.shape_cast %3 : vector<16xf32> to vector<16x1xf32>
    %cst_5 = arith.constant 3.200000e+01 : f32
    %5 = vector.broadcast %cst_5 : f32 to vector<16x1xf32>
    %6 = arith.divf %4, %5 : vector<16x1xf32>
    %7 = vector.broadcast %6 : vector<16x1xf32> to vector<16x32xf32>
    %8 = arith.subf %0, %7 : vector<16x32xf32>
    %9 = arith.mulf %8, %8 : vector<16x32xf32>
    %cst_6 = arith.constant dense<0.000000e+00> : vector<16xf32>
    %10 = vector.multi_reduction <add>, %9, %cst_6 [1] : vector<16x32xf32> to vector<16xf32>
    %11 = vector.shape_cast %10 : vector<16xf32> to vector<16x1xf32>
    %cst_7 = arith.constant 3.200000e+01 : f32
    %12 = vector.broadcast %cst_7 : f32 to vector<16x1xf32>
    %13 = arith.divf %11, %12 : vector<16x1xf32>
    %cst_8 = arith.constant 9.99999974E-6 : f32
    %14 = vector.broadcast %cst_8 : f32 to vector<16x1xf32>
    %15 = arith.addf %13, %14 : vector<16x1xf32>
    %16 = math.rsqrt %15 : vector<16x1xf32>
    %17 = vector.broadcast %1 : vector<1x32xf32> to vector<16x32xf32>
    %18 = vector.broadcast %16 : vector<16x1xf32> to vector<16x32xf32>
    %19 = arith.mulf %17, %18 : vector<16x32xf32>
    %20 = arith.mulf %0, %19 : vector<16x32xf32>
    %21 = vector.broadcast %6 : vector<16x1xf32> to vector<16x32xf32>
    %22 = arith.mulf %21, %19 : vector<16x32xf32>
    %23 = vector.broadcast %2 : vector<1x32xf32> to vector<16x32xf32>
    %24 = arith.subf %23, %22 : vector<16x32xf32>
    %25 = arith.addf %20, %24 : vector<16x32xf32>
    %26 = arith.truncf %25 : vector<16x32xf32> to vector<16x32xbf16>
    %c0_9 = arith.constant 0 : index
    %c0_10 = arith.constant 0 : index
    %27 = vector.load %arg4[%c0_9, %c0_10] : memref<32x32xbf16, #tpu.memory_space<vmem>>, vector<32x32xbf16>
    %cst_11 = arith.constant dense<0.000000e+00> : vector<16x32xf32>
    %28 = tpu.matmul %26, %27, %cst_11 {dimension_numbers = #tpu.dot_dimension_numbers<[1], [0], [0], [1], [0, 0, 1, 1], [], []>} : vector<16x32xbf16>, vector<32x32xbf16>, vector<16x32xf32> -> vector<16x32xf32>
    %c0_12 = arith.constant 0 : index
    %c0_13 = arith.constant 0 : index
    %29 = vector.load %arg5[%c0_12, %c0_13] : memref<1x32xf32, #tpu.memory_space<vmem>>, vector<1x32xf32>
    %30 = vector.broadcast %29 : vector<1x32xf32> to vector<16x32xf32>
    %31 = arith.addf %28, %30 : vector<16x32xf32>
    %c0_14 = arith.constant 0 : index
    %c0_15 = arith.constant 0 : index
    %32 = vector.load %arg6[%c0_14, %c0_15] : memref<1x32xf32, #tpu.memory_space<vmem>>, vector<1x32xf32>
    %c0_16 = arith.constant 0 : index
    %c0_17 = arith.constant 0 : index
    %33 = vector.load %arg7[%c0_16, %c0_17] : memref<1x32xf32, #tpu.memory_space<vmem>>, vector<1x32xf32>
    %cst_18 = arith.constant dense<0.000000e+00> : vector<16xf32>
    %34 = vector.multi_reduction <add>, %31, %cst_18 [1] : vector<16x32xf32> to vector<16xf32>
    %35 = vector.shape_cast %34 : vector<16xf32> to vector<16x1xf32>
    %cst_19 = arith.constant 3.200000e+01 : f32
    %36 = vector.broadcast %cst_19 : f32 to vector<16x1xf32>
    %37 = arith.divf %35, %36 : vector<16x1xf32>
    %38 = vector.broadcast %37 : vector<16x1xf32> to vector<16x32xf32>
    %39 = arith.subf %31, %38 : vector<16x32xf32>
    %40 = arith.mulf %39, %39 : vector<16x32xf32>
    %cst_20 = arith.constant dense<0.000000e+00> : vector<16xf32>
    %41 = vector.multi_reduction <add>, %40, %cst_20 [1] : vector<16x32xf32> to vector<16xf32>
    %42 = vector.shape_cast %41 : vector<16xf32> to vector<16x1xf32>
    %cst_21 = arith.constant 3.200000e+01 : f32
    %43 = vector.broadcast %cst_21 : f32 to vector<16x1xf32>
    %44 = arith.divf %42, %43 : vector<16x1xf32>
    %cst_22 = arith.constant 9.99999974E-6 : f32
    %45 = vector.broadcast %cst_22 : f32 to vector<16x1xf32>
    %46 = arith.addf %44, %45 : vector<16x1xf32>
    %47 = math.rsqrt %46 : vector<16x1xf32>
    %48 = vector.broadcast %32 : vector<1x32xf32> to vector<16x32xf32>
    %49 = vector.broadcast %47 : vector<16x1xf32> to vector<16x32xf32>
    %50 = arith.mulf %48, %49 : vector<16x32xf32>
    %51 = arith.mulf %31, %50 : vector<16x32xf32>
    %52 = vector.broadcast %37 : vector<16x1xf32> to vector<16x32xf32>
    %53 = arith.mulf %52, %50 : vector<16x32xf32>
    %54 = vector.broadcast %33 : vector<1x32xf32> to vector<16x32xf32>
    %55 = arith.subf %54, %53 : vector<16x32xf32>
    %56 = arith.addf %51, %55 : vector<16x32xf32>
    %57 = arith.truncf %56 : vector<16x32xf32> to vector<16x32xbf16>
    %58 = arith.negf %57 : vector<16x32xbf16>
    %59 = math.exp %58 : vector<16x32xbf16>
    %cst_23 = arith.constant 1.000000e+00 : bf16
    %60 = vector.broadcast %cst_23 : bf16 to vector<16x32xbf16>
    %61 = arith.addf %60, %59 : vector<16x32xbf16>
    %62 = arith.divf %60, %61 : vector<16x32xbf16>
    %63 = arith.mulf %57, %62 : vector<16x32xbf16>
    %c0_24 = arith.constant 0 : index
    %c0_25 = arith.constant 0 : index
    %64 = vector.load %arg8[%c0_24, %c0_25] : memref<32x32xbf16, #tpu.memory_space<vmem>>, vector<32x32xbf16>
    %cst_26 = arith.constant dense<0.000000e+00> : vector<16x32xf32>
    %65 = tpu.matmul %63, %64, %cst_26 {dimension_numbers = #tpu.dot_dimension_numbers<[1], [0], [0], [1], [0, 0, 1, 1], [], []>} : vector<16x32xbf16>, vector<32x32xbf16>, vector<16x32xf32> -> vector<16x32xf32>
    %c0_27 = arith.constant 0 : index
    %c0_28 = arith.constant 0 : index
    %66 = vector.load %arg9[%c0_27, %c0_28] : memref<1x32xf32, #tpu.memory_space<vmem>>, vector<1x32xf32>
    %67 = vector.broadcast %66 : vector<1x32xf32> to vector<16x32xf32>
    %68 = arith.addf %65, %67 : vector<16x32xf32>
    %c0_29 = arith.constant 0 : index
    %c0_30 = arith.constant 0 : index
    %69 = vector.load %arg10[%c0_29, %c0_30] : memref<1x32xf32, #tpu.memory_space<vmem>>, vector<1x32xf32>
    %c0_31 = arith.constant 0 : index
    %c0_32 = arith.constant 0 : index
    %70 = vector.load %arg11[%c0_31, %c0_32] : memref<1x32xf32, #tpu.memory_space<vmem>>, vector<1x32xf32>
    %cst_33 = arith.constant dense<0.000000e+00> : vector<16xf32>
    %71 = vector.multi_reduction <add>, %68, %cst_33 [1] : vector<16x32xf32> to vector<16xf32>
    %72 = vector.shape_cast %71 : vector<16xf32> to vector<16x1xf32>
    %cst_34 = arith.constant 3.200000e+01 : f32
    %73 = vector.broadcast %cst_34 : f32 to vector<16x1xf32>
    %74 = arith.divf %72, %73 : vector<16x1xf32>
    %75 = vector.broadcast %74 : vector<16x1xf32> to vector<16x32xf32>
    %76 = arith.subf %68, %75 : vector<16x32xf32>
    %77 = arith.mulf %76, %76 : vector<16x32xf32>
    %cst_35 = arith.constant dense<0.000000e+00> : vector<16xf32>
    %78 = vector.multi_reduction <add>, %77, %cst_35 [1] : vector<16x32xf32> to vector<16xf32>
    %79 = vector.shape_cast %78 : vector<16xf32> to vector<16x1xf32>
    %cst_36 = arith.constant 3.200000e+01 : f32
    %80 = vector.broadcast %cst_36 : f32 to vector<16x1xf32>
    %81 = arith.divf %79, %80 : vector<16x1xf32>
    %cst_37 = arith.constant 9.99999974E-6 : f32
    %82 = vector.broadcast %cst_37 : f32 to vector<16x1xf32>
    %83 = arith.addf %81, %82 : vector<16x1xf32>
    %84 = math.rsqrt %83 : vector<16x1xf32>
    %85 = vector.broadcast %69 : vector<1x32xf32> to vector<16x32xf32>
    %86 = vector.broadcast %84 : vector<16x1xf32> to vector<16x32xf32>
    %87 = arith.mulf %85, %86 : vector<16x32xf32>
    %88 = arith.mulf %68, %87 : vector<16x32xf32>
    %89 = vector.broadcast %74 : vector<16x1xf32> to vector<16x32xf32>
    %90 = arith.mulf %89, %87 : vector<16x32xf32>
    %91 = vector.broadcast %70 : vector<1x32xf32> to vector<16x32xf32>
    %92 = arith.subf %91, %90 : vector<16x32xf32>
    %93 = arith.addf %88, %92 : vector<16x32xf32>
    %94 = arith.truncf %93 : vector<16x32xf32> to vector<16x32xbf16>
    %95 = arith.negf %94 : vector<16x32xbf16>
    %96 = math.exp %95 : vector<16x32xbf16>
    %cst_38 = arith.constant 1.000000e+00 : bf16
    %97 = vector.broadcast %cst_38 : bf16 to vector<16x32xbf16>
    %98 = arith.addf %97, %96 : vector<16x32xbf16>
    %99 = arith.divf %97, %98 : vector<16x32xbf16>
    %100 = arith.mulf %94, %99 : vector<16x32xbf16>
    %c0_39 = arith.constant 0 : index
    %c0_40 = arith.constant 0 : index
    %101 = vector.load %arg12[%c0_39, %c0_40] : memref<32x64xbf16, #tpu.memory_space<vmem>>, vector<32x64xbf16>
    %cst_41 = arith.constant dense<0.000000e+00> : vector<16x64xf32>
    %102 = tpu.matmul %100, %101, %cst_41 {dimension_numbers = #tpu.dot_dimension_numbers<[1], [0], [0], [1], [0, 0, 1, 1], [], []>} : vector<16x32xbf16>, vector<32x64xbf16>, vector<16x64xf32> -> vector<16x64xf32>
    %c0_42 = arith.constant 0 : index
    %c0_43 = arith.constant 0 : index
    %103 = vector.load %arg13[%c0_42, %c0_43] : memref<1x64xf32, #tpu.memory_space<vmem>>, vector<1x64xf32>
    %104 = vector.broadcast %103 : vector<1x64xf32> to vector<16x64xf32>
    %105 = arith.addf %102, %104 : vector<16x64xf32>
    %c0_44 = arith.constant 0 : index
    %c0_45 = arith.constant 0 : index
    %106 = vector.load %arg14[%c0_44, %c0_45] : memref<1x64xf32, #tpu.memory_space<vmem>>, vector<1x64xf32>
    %c0_46 = arith.constant 0 : index
    %c0_47 = arith.constant 0 : index
    %107 = vector.load %arg15[%c0_46, %c0_47] : memref<1x64xf32, #tpu.memory_space<vmem>>, vector<1x64xf32>
    %cst_48 = arith.constant dense<0.000000e+00> : vector<16xf32>
    %108 = vector.multi_reduction <add>, %105, %cst_48 [1] : vector<16x64xf32> to vector<16xf32>
    %109 = vector.shape_cast %108 : vector<16xf32> to vector<16x1xf32>
    %cst_49 = arith.constant 6.400000e+01 : f32
    %110 = vector.broadcast %cst_49 : f32 to vector<16x1xf32>
    %111 = arith.divf %109, %110 : vector<16x1xf32>
    %112 = vector.broadcast %111 : vector<16x1xf32> to vector<16x64xf32>
    %113 = arith.subf %105, %112 : vector<16x64xf32>
    %114 = arith.mulf %113, %113 : vector<16x64xf32>
    %cst_50 = arith.constant dense<0.000000e+00> : vector<16xf32>
    %115 = vector.multi_reduction <add>, %114, %cst_50 [1] : vector<16x64xf32> to vector<16xf32>
    %116 = vector.shape_cast %115 : vector<16xf32> to vector<16x1xf32>
    %cst_51 = arith.constant 6.400000e+01 : f32
    %117 = vector.broadcast %cst_51 : f32 to vector<16x1xf32>
    %118 = arith.divf %116, %117 : vector<16x1xf32>
    %cst_52 = arith.constant 9.99999974E-6 : f32
    %119 = vector.broadcast %cst_52 : f32 to vector<16x1xf32>
    %120 = arith.addf %118, %119 : vector<16x1xf32>
    %121 = math.rsqrt %120 : vector<16x1xf32>
    %122 = vector.broadcast %106 : vector<1x64xf32> to vector<16x64xf32>
    %123 = vector.broadcast %121 : vector<16x1xf32> to vector<16x64xf32>
    %124 = arith.mulf %122, %123 : vector<16x64xf32>
    %125 = arith.mulf %105, %124 : vector<16x64xf32>
    %126 = vector.broadcast %111 : vector<16x1xf32> to vector<16x64xf32>
    %127 = arith.mulf %126, %124 : vector<16x64xf32>
    %128 = vector.broadcast %107 : vector<1x64xf32> to vector<16x64xf32>
    %129 = arith.subf %128, %127 : vector<16x64xf32>
    %130 = arith.addf %125, %129 : vector<16x64xf32>
    %131 = arith.truncf %130 : vector<16x64xf32> to vector<16x64xbf16>
    %132 = arith.negf %131 : vector<16x64xbf16>
    %133 = math.exp %132 : vector<16x64xbf16>
    %cst_53 = arith.constant 1.000000e+00 : bf16
    %134 = vector.broadcast %cst_53 : bf16 to vector<16x64xbf16>
    %135 = arith.addf %134, %133 : vector<16x64xbf16>
    %136 = arith.divf %134, %135 : vector<16x64xbf16>
    %137 = arith.mulf %131, %136 : vector<16x64xbf16>
    %c0_54 = arith.constant 0 : index
    %c0_55 = arith.constant 0 : index
    %138 = vector.load %arg16[%c0_54, %c0_55] : memref<64x16xbf16, #tpu.memory_space<vmem>>, vector<64x16xbf16>
    %cst_56 = arith.constant dense<0.000000e+00> : vector<16x16xf32>
    %139 = tpu.matmul %137, %138, %cst_56 {dimension_numbers = #tpu.dot_dimension_numbers<[1], [0], [0], [1], [0, 0, 1, 1], [], []>} : vector<16x64xbf16>, vector<64x16xbf16>, vector<16x16xf32> -> vector<16x16xf32>
    %c0_57 = arith.constant 0 : index
    %c0_58 = arith.constant 0 : index
    %140 = vector.load %arg17[%c0_57, %c0_58] : memref<1x16xf32, #tpu.memory_space<vmem>>, vector<1x16xf32>
    %141 = vector.broadcast %140 : vector<1x16xf32> to vector<16x16xf32>
    %142 = arith.addf %139, %141 : vector<16x16xf32>
    %c0_59 = arith.constant 0 : index
    %c0_60 = arith.constant 0 : index
    %143 = vector.load %arg18[%c0_59, %c0_60] : memref<16x16xf32, #tpu.memory_space<vmem>>, vector<16x16xf32>
    tpu.vector_store %arg18[%c0_59, %c0_60], %142 {strides = array<i32>} : memref<16x16xf32, #tpu.memory_space<vmem>>, vector<16x16xf32>,
    return
  }
  func.func @transform_0(%arg0: i32) -> (i32, i32) {
    %c0_i32 = arith.constant 0 : i32
    %c0_i32_0 = arith.constant 0 : i32
    return %arg0, %c0_i32 : i32, i32
  }
  func.func @transform_1(%arg0: i32) -> (i32, i32) {
    %c0_i32 = arith.constant 0 : i32
    %c0_i32_0 = arith.constant 0 : i32
    %c0_i32_1 = arith.constant 0 : i32
    return %c0_i32, %c0_i32_0 : i32, i32
  }
  func.func @transform_2(%arg0: i32) -> (i32, i32) {
    %c0_i32 = arith.constant 0 : i32
    %c0_i32_0 = arith.constant 0 : i32
    %c0_i32_1 = arith.constant 0 : i32
    return %c0_i32, %c0_i32_0 : i32, i32
  }
  func.func @transform_3(%arg0: i32) -> (i32, i32) {
    %c0_i32 = arith.constant 0 : i32
    %c0_i32_0 = arith.constant 0 : i32
    %c0_i32_1 = arith.constant 0 : i32
    return %c0_i32, %c0_i32_0 : i32, i32
  }
  func.func @transform_4(%arg0: i32) -> (i32, i32) {
    %c0_i32 = arith.constant 0 : i32
    %c0_i32_0 = arith.constant 0 : i32
    %c0_i32_1 = arith.constant 0 : i32
    return %c0_i32, %c0_i32_0 : i32, i32
  }
  func.func @transform_5(%arg0: i32) -> (i32, i32) {
    %c0_i32 = arith.constant 0 : i32
    %c0_i32_0 = arith.constant 0 : i32
    %c0_i32_1 = arith.constant 0 : i32
    return %c0_i32, %c0_i32_0 : i32, i32
  }
  func.func @transform_6(%arg0: i32) -> (i32, i32) {
    %c0_i32 = arith.constant 0 : i32
    %c0_i32_0 = arith.constant 0 : i32
    %c0_i32_1 = arith.constant 0 : i32
    return %c0_i32, %c0_i32_0 : i32, i32
  }
  func.func @transform_7(%arg0: i32) -> (i32, i32) {
    %c0_i32 = arith.constant 0 : i32
    %c0_i32_0 = arith.constant 0 : i32
    %c0_i32_1 = arith.constant 0 : i32
    return %c0_i32, %c0_i32_0 : i32, i32
  }
  func.func @transform_8(%arg0: i32) -> (i32, i32) {
    %c0_i32 = arith.constant 0 : i32
    %c0_i32_0 = arith.constant 0 : i32
    %c0_i32_1 = arith.constant 0 : i32
    return %c0_i32, %c0_i32_0 : i32, i32
  }
  func.func @transform_9(%arg0: i32) -> (i32, i32) {
    %c0_i32 = arith.constant 0 : i32
    %c0_i32_0 = arith.constant 0 : i32
    %c0_i32_1 = arith.constant 0 : i32
    return %c0_i32, %c0_i32_0 : i32, i32
  }
  func.func @transform_10(%arg0: i32) -> (i32, i32) {
    %c0_i32 = arith.constant 0 : i32
    %c0_i32_0 = arith.constant 0 : i32
    %c0_i32_1 = arith.constant 0 : i32
    return %c0_i32, %c0_i32_0 : i32, i32
  }
  func.func @transform_11(%arg0: i32) -> (i32, i32) {
    %c0_i32 = arith.constant 0 : i32
    %c0_i32_0 = arith.constant 0 : i32
    %c0_i32_1 = arith.constant 0 : i32
    return %c0_i32, %c0_i32_0 : i32, i32
  }
  func.func @transform_12(%arg0: i32) -> (i32, i32) {
    %c0_i32 = arith.constant 0 : i32
    %c0_i32_0 = arith.constant 0 : i32
    %c0_i32_1 = arith.constant 0 : i32
    return %c0_i32, %c0_i32_0 : i32, i32
  }
  func.func @transform_13(%arg0: i32) -> (i32, i32) {
    %c0_i32 = arith.constant 0 : i32
    %c0_i32_0 = arith.constant 0 : i32
    %c0_i32_1 = arith.constant 0 : i32
    return %c0_i32, %c0_i32_0 : i32, i32
  }
  func.func @transform_14(%arg0: i32) -> (i32, i32) {
    %c0_i32 = arith.constant 0 : i32
    %c0_i32_0 = arith.constant 0 : i32
    %c0_i32_1 = arith.constant 0 : i32
    return %c0_i32, %c0_i32_0 : i32, i32
  }
  func.func @transform_15(%arg0: i32) -> (i32, i32) {
    %c0_i32 = arith.constant 0 : i32
    %c0_i32_0 = arith.constant 0 : i32
    %c0_i32_1 = arith.constant 0 : i32
    return %c0_i32, %c0_i32_0 : i32, i32
  }
  func.func @transform_16(%arg0: i32) -> (i32, i32) {
    %c0_i32 = arith.constant 0 : i32
    %c0_i32_0 = arith.constant 0 : i32
    %c0_i32_1 = arith.constant 0 : i32
    return %c0_i32, %c0_i32_0 : i32, i32
  }
  func.func @transform_17(%arg0: i32) -> (i32, i32) {
    %c0_i32 = arith.constant 0 : i32
    %c0_i32_0 = arith.constant 0 : i32
    return %arg0, %c0_i32 : i32, i32
  }
}

module attributes {stable_mosaic.version = 11 : i64} {
  func.func @_resident_kernel(%arg0: i32, %arg1: memref<16x32xf32, #tpu.memory_space<vmem>>, %arg2: memref<1x32xf32, #tpu.memory_space<vmem>>, %arg3: memref<1x32xf32, #tpu.memory_space<vmem>>, %arg4: memref<32x32xbf16, #tpu.memory_space<vmem>>, %arg5: memref<1x32xf32, #tpu.memory_space<vmem>>, %arg6: memref<1x32xf32, #tpu.memory_space<vmem>>, %arg7: memref<1x32xf32, #tpu.memory_space<vmem>>, %arg8: memref<32x32xbf16, #tpu.memory_space<vmem>>, %arg9: memref<1x32xf32, #tpu.memory_space<vmem>>, %arg10: memref<1x32xf32, #tpu.memory_space<vmem>>, %arg11: memref<1x32xf32, #tpu.memory_space<vmem>>, %arg12: memref<32x64xbf16, #tpu.memory_space<vmem>>, %arg13: memref<1x64xf32, #tpu.memory_space<vmem>>, %arg14: memref<1x64xf32, #tpu.memory_space<vmem>>, %arg15: memref<1x64xf32, #tpu.memory_space<vmem>>, %arg16: memref<64x16xbf16, #tpu.memory_space<vmem>>, %arg17: memref<1x16xf32, #tpu.memory_space<vmem>>, %arg18: memref<16x16xf32, #tpu.memory_space<vmem>>) attributes {dimension_semantics = [#tpu.dimension_semantics<parallel>], iteration_bounds = array<i64: 1>, scalar_prefetch = 0 : i64, scratch_operands = 0 : i64, tpu.core_type = #tpu.core_type<tc>, window_params = [{transform_indices = @transform_0, window_bounds = array<i64: 16, 32>}, {pipeline_mode = #tpu.pipeline_mode<synchronous>, transform_indices = @transform_1, window_bounds = array<i64: 1, 32>}, {pipeline_mode = #tpu.pipeline_mode<synchronous>, transform_indices = @transform_2, window_bounds = array<i64: 1, 32>}, {pipeline_mode = #tpu.pipeline_mode<synchronous>, transform_indices = @transform_3, window_bounds = array<i64: 32, 32>}, {pipeline_mode = #tpu.pipeline_mode<synchronous>, transform_indices = @transform_4, window_bounds = array<i64: 1, 32>}, {pipeline_mode = #tpu.pipeline_mode<synchronous>, transform_indices = @transform_5, window_bounds = array<i64: 1, 32>}, {pipeline_mode = #tpu.pipeline_mode<synchronous>, transform_indices = @transform_6, window_bounds = array<i64: 1, 32>}, {pipeline_mode = #tpu.pipeline_mode<synchronous>, transform_indices = @transform_7, window_bounds = array<i64: 32, 32>}, {pipeline_mode = #tpu.pipeline_mode<synchronous>, transform_indices = @transform_8, window_bounds = array<i64: 1, 32>}, {pipeline_mode = #tpu.pipeline_mode<synchronous>, transform_indices = @transform_9, window_bounds = array<i64: 1, 32>}, {pipeline_mode = #tpu.pipeline_mode<synchronous>, transform_indices = @transform_10, window_bounds = array<i64: 1, 32>}, {pipeline_mode = #tpu.pipeline_mode<synchronous>, transform_indices = @transform_11, window_bounds = array<i64: 32, 64>}, {pipeline_mode = #tpu.pipeline_mode<synchronous>, transform_indices = @transform_12, window_bounds = array<i64: 1, 64>}, {pipeline_mode = #tpu.pipeline_mode<synchronous>, transform_indices = @transform_13, window_bounds = array<i64: 1, 64>}, {pipeline_mode = #tpu.pipeline_mode<synchronous>, transform_indices = @transform_14, window_bounds = array<i64: 1, 64>}, {pipeline_mode = #tpu.pipeline_mode<synchronous>, transform_indices = @transform_15, window_bounds = array<i64: 64, 16>}, {pipeline_mode = #tpu.pipeline_mode<synchronous>, transform_indices = @transform_16, window_bounds = array<i64: 1, 16>}, {transform_indices = @transform_17, window_bounds = array<i64: 16, 16>}]} {
    %c0 = arith.constant 0 : index
    %c0_0 = arith.constant 0 : index
    %0 = vector.load %arg1[%c0, %c0_0] : memref<16x32xf32, #tpu.memory_space<vmem>>, vector<16x32xf32>
    %c0_1 = arith.constant 0 : index
    %c0_2 = arith.constant 0 : index
    %1 = vector.load %arg2[%c0_1, %c0_2] : memref<1x32xf32, #tpu.memory_space<vmem>>, vector<1x32xf32>
    %c0_3 = arith.constant 0 : index
    %c0_4 = arith.constant 0 : index
    %2 = vector.load %arg3[%c0_3, %c0_4] : memref<1x32xf32, #tpu.memory_space<vmem>>, vector<1x32xf32>
    %cst = arith.constant dense<0.000000e+00> : vector<16xf32>
    %3 = vector.multi_reduction <add>, %0, %cst [1] : vector<16x32xf32> to vector<16xf32>
    %4 = vector.shape_cast %3 : vector<16xf32> to vector<16x1xf32>
    %cst_5 = arith.constant 3.200000e+01 : f32
    %5 = vector.broadcast %cst_5 : f32 to vector<16x1xf32>
    %6 = arith.divf %4, %5 : vector<16x1xf32>
    %7 = vector.broadcast %6 : vector<16x1xf32> to vector<16x32xf32>
    %8 = arith.subf %0, %7 : vector<16x32xf32>
    %9 = arith.mulf %8, %8 : vector<16x32xf32>
    %cst_6 = arith.constant dense<0.000000e+00> : vector<16xf32>
    %10 = vector.multi_reduction <add>, %9, %cst_6 [1] : vector<16x32xf32> to vector<16xf32>
    %11 = vector.shape_cast %10 : vector<16xf32> to vector<16x1xf32>
    %cst_7 = arith.constant 3.200000e+01 : f32
    %12 = vector.broadcast %cst_7 : f32 to vector<16x1xf32>
    %13 = arith.divf %11, %12 : vector<16x1xf32>
    %cst_8 = arith.constant 9.99999974E-6 : f32
    %14 = vector.broadcast %cst_8 : f32 to vector<16x1xf32>
    %15 = arith.addf %13, %14 : vector<16x1xf32>
    %16 = math.rsqrt %15 : vector<16x1xf32>
    %17 = vector.broadcast %1 : vector<1x32xf32> to vector<16x32xf32>
    %18 = vector.broadcast %16 : vector<16x1xf32> to vector<16x32xf32>
    %19 = arith.mulf %17, %18 : vector<16x32xf32>
    %20 = arith.mulf %0, %19 : vector<16x32xf32>
    %21 = vector.broadcast %6 : vector<16x1xf32> to vector<16x32xf32>
    %22 = arith.mulf %21, %19 : vector<16x32xf32>
    %23 = vector.broadcast %2 : vector<1x32xf32> to vector<16x32xf32>
    %24 = arith.subf %23, %22 : vector<16x32xf32>
    %25 = arith.addf %20, %24 : vector<16x32xf32>
    %26 = arith.truncf %25 : vector<16x32xf32> to vector<16x32xbf16>
    %c0_9 = arith.constant 0 : index
    %c0_10 = arith.constant 0 : index
    %27 = vector.load %arg4[%c0_9, %c0_10] : memref<32x32xbf16, #tpu.memory_space<vmem>>, vector<32x32xbf16>
    %cst_11 = arith.constant dense<0.000000e+00> : vector<16x32xf32>
    %28 = tpu.matmul %26, %27, %cst_11 {dimension_numbers = #tpu.dot_dimension_numbers<[1], [0], [0], [1], [0, 0, 1, 1], [], []>} : vector<16x32xbf16>, vector<32x32xbf16>, vector<16x32xf32> -> vector<16x32xf32>
    %c0_12 = arith.constant 0 : index
    %c0_13 = arith.constant 0 : index
    %29 = vector.load %arg5[%c0_12, %c0_13] : memref<1x32xf32, #tpu.memory_space<vmem>>, vector<1x32xf32>
    %30 = vector.broadcast %29 : vector<1x32xf32> to vector<16x32xf32>
    %31 = arith.addf %28, %30 : vector<16x32xf32>
    %c0_14 = arith.constant 0 : index
    %c0_15 = arith.constant 0 : index
    %32 = vector.load %arg6[%c0_14, %c0_15] : memref<1x32xf32, #tpu.memory_space<vmem>>, vector<1x32xf32>
    %c0_16 = arith.constant 0 : index
    %c0_17 = arith.constant 0 : index
    %33 = vector.load %arg7[%c0_16, %c0_17] : memref<1x32xf32, #tpu.memory_space<vmem>>, vector<1x32xf32>
    %cst_18 = arith.constant dense<0.000000e+00> : vector<16xf32>
    %34 = vector.multi_reduction <add>, %31, %cst_18 [1] : vector<16x32xf32> to vector<16xf32>
    %35 = vector.shape_cast %34 : vector<16xf32> to vector<16x1xf32>
    %cst_19 = arith.constant 3.200000e+01 : f32
    %36 = vector.broadcast %cst_19 : f32 to vector<16x1xf32>
    %37 = arith.divf %35, %36 : vector<16x1xf32>
    %38 = vector.broadcast %37 : vector<16x1xf32> to vector<16x32xf32>
    %39 = arith.subf %31, %38 : vector<16x32xf32>
    %40 = arith.mulf %39, %39 : vector<16x32xf32>
    %cst_20 = arith.constant dense<0.000000e+00> : vector<16xf32>
    %41 = vector.multi_reduction <add>, %40, %cst_20 [1] : vector<16x32xf32> to vector<16xf32>
    %42 = vector.shape_cast %41 : vector<16xf32> to vector<16x1xf32>
    %cst_21 = arith.constant 3.200000e+01 : f32
    %43 = vector.broadcast %cst_21 : f32 to vector<16x1xf32>
    %44 = arith.divf %42, %43 : vector<16x1xf32>
    %cst_22 = arith.constant 9.99999974E-6 : f32
    %45 = vector.broadcast %cst_22 : f32 to vector<16x1xf32>
    %46 = arith.addf %44, %45 : vector<16x1xf32>
    %47 = math.rsqrt %46 : vector<16x1xf32>
    %48 = vector.broadcast %32 : vector<1x32xf32> to vector<16x32xf32>
    %49 = vector.broadcast %47 : vector<16x1xf32> to vector<16x32xf32>
    %50 = arith.mulf %48, %49 : vector<16x32xf32>
    %51 = arith.mulf %31, %50 : vector<16x32xf32>
    %52 = vector.broadcast %37 : vector<16x1xf32> to vector<16x32xf32>
    %53 = arith.mulf %52, %50 : vector<16x32xf32>
    %54 = vector.broadcast %33 : vector<1x32xf32> to vector<16x32xf32>
    %55 = arith.subf %54, %53 : vector<16x32xf32>
    %56 = arith.addf %51, %55 : vector<16x32xf32>
    %57 = arith.truncf %56 : vector<16x32xf32> to vector<16x32xbf16>
    %58 = arith.negf %57 : vector<16x32xbf16>
    %59 = math.exp %58 : vector<16x32xbf16>
    %cst_23 = arith.constant 1.000000e+00 : bf16
    %60 = vector.broadcast %cst_23 : bf16 to vector<16x32xbf16>
    %61 = arith.addf %60, %59 : vector<16x32xbf16>
    %62 = arith.divf %60, %61 : vector<16x32xbf16>
    %63 = arith.mulf %57, %62 : vector<16x32xbf16>
    %c0_24 = arith.constant 0 : index
    %c0_25 = arith.constant 0 : index
    %64 = vector.load %arg8[%c0_24, %c0_25] : memref<32x32xbf16, #tpu.memory_space<vmem>>, vector<32x32xbf16>
    %cst_26 = arith.constant dense<0.000000e+00> : vector<16x32xf32>
    %65 = tpu.matmul %63, %64, %cst_26 {dimension_numbers = #tpu.dot_dimension_numbers<[1], [0], [0], [1], [0, 0, 1, 1], [], []>} : vector<16x32xbf16>, vector<32x32xbf16>, vector<16x32xf32> -> vector<16x32xf32>
    %c0_27 = arith.constant 0 : index
    %c0_28 = arith.constant 0 : index
    %66 = vector.load %arg9[%c0_27, %c0_28] : memref<1x32xf32, #tpu.memory_space<vmem>>, vector<1x32xf32>
    %67 = vector.broadcast %66 : vector<1x32xf32> to vector<16x32xf32>
    %68 = arith.addf %65, %67 : vector<16x32xf32>
    %c0_29 = arith.constant 0 : index
    %c0_30 = arith.constant 0 : index
    %69 = vector.load %arg10[%c0_29, %c0_30] : memref<1x32xf32, #tpu.memory_space<vmem>>, vector<1x32xf32>
    %c0_31 = arith.constant 0 : index
    %c0_32 = arith.constant 0 : index
    %70 = vector.load %arg11[%c0_31, %c0_32] : memref<1x32xf32, #tpu.memory_space<vmem>>, vector<1x32xf32>
    %cst_33 = arith.constant dense<0.000000e+00> : vector<16xf32>
    %71 = vector.multi_reduction <add>, %68, %cst_33 [1] : vector<16x32xf32> to vector<16xf32>
    %72 = vector.shape_cast %71 : vector<16xf32> to vector<16x1xf32>
    %cst_34 = arith.constant 3.200000e+01 : f32
    %73 = vector.broadcast %cst_34 : f32 to vector<16x1xf32>
    %74 = arith.divf %72, %73 : vector<16x1xf32>
    %75 = vector.broadcast %74 : vector<16x1xf32> to vector<16x32xf32>
    %76 = arith.subf %68, %75 : vector<16x32xf32>
    %77 = arith.mulf %76, %76 : vector<16x32xf32>
    %cst_35 = arith.constant dense<0.000000e+00> : vector<16xf32>
    %78 = vector.multi_reduction <add>, %77, %cst_35 [1] : vector<16x32xf32> to vector<16xf32>
    %79 = vector.shape_cast %78 : vector<16xf32> to vector<16x1xf32>
    %cst_36 = arith.constant 3.200000e+01 : f32
    %80 = vector.broadcast %cst_36 : f32 to vector<16x1xf32>
    %81 = arith.divf %79, %80 : vector<16x1xf32>
    %cst_37 = arith.constant 9.99999974E-6 : f32
    %82 = vector.broadcast %cst_37 : f32 to vector<16x1xf32>
    %83 = arith.addf %81, %82 : vector<16x1xf32>
    %84 = math.rsqrt %83 : vector<16x1xf32>
    %85 = vector.broadcast %69 : vector<1x32xf32> to vector<16x32xf32>
    %86 = vector.broadcast %84 : vector<16x1xf32> to vector<16x32xf32>
    %87 = arith.mulf %85, %86 : vector<16x32xf32>
    %88 = arith.mulf %68, %87 : vector<16x32xf32>
    %89 = vector.broadcast %74 : vector<16x1xf32> to vector<16x32xf32>
    %90 = arith.mulf %89, %87 : vector<16x32xf32>
    %91 = vector.broadcast %70 : vector<1x32xf32> to vector<16x32xf32>
    %92 = arith.subf %91, %90 : vector<16x32xf32>
    %93 = arith.addf %88, %92 : vector<16x32xf32>
    %94 = arith.truncf %93 : vector<16x32xf32> to vector<16x32xbf16>
    %95 = arith.negf %94 : vector<16x32xbf16>
    %96 = math.exp %95 : vector<16x32xbf16>
    %cst_38 = arith.constant 1.000000e+00 : bf16
    %97 = vector.broadcast %cst_38 : bf16 to vector<16x32xbf16>
    %98 = arith.addf %97, %96 : vector<16x32xbf16>
    %99 = arith.divf %97, %98 : vector<16x32xbf16>
    %100 = arith.mulf %94, %99 : vector<16x32xbf16>
    %c0_39 = arith.constant 0 : index
    %c0_40 = arith.constant 0 : index
    %101 = vector.load %arg12[%c0_39, %c0_40] : memref<32x64xbf16, #tpu.memory_space<vmem>>, vector<32x64xbf16>
    %cst_41 = arith.constant dense<0.000000e+00> : vector<16x64xf32>
    %102 = tpu.matmul %100, %101, %cst_41 {dimension_numbers = #tpu.dot_dimension_numbers<[1], [0], [0], [1], [0, 0, 1, 1], [], []>} : vector<16x32xbf16>, vector<32x64xbf16>, vector<16x64xf32> -> vector<16x64xf32>
    %c0_42 = arith.constant 0 : index
    %c0_43 = arith.constant 0 : index
    %103 = vector.load %arg13[%c0_42, %c0_43] : memref<1x64xf32, #tpu.memory_space<vmem>>, vector<1x64xf32>
    %104 = vector.broadcast %103 : vector<1x64xf32> to vector<16x64xf32>
    %105 = arith.addf %102, %104 : vector<16x64xf32>
    %c0_44 = arith.constant 0 : index
    %c0_45 = arith.constant 0 : index
    %106 = vector.load %arg14[%c0_44, %c0_45] : memref<1x64xf32, #tpu.memory_space<vmem>>, vector<1x64xf32>
    %c0_46 = arith.constant 0 : index
    %c0_47 = arith.constant 0 : index
    %107 = vector.load %arg15[%c0_46, %c0_47] : memref<1x64xf32, #tpu.memory_space<vmem>>, vector<1x64xf32>
    %cst_48 = arith.constant dense<0.000000e+00> : vector<16xf32>
    %108 = vector.multi_reduction <add>, %105, %cst_48 [1] : vector<16x64xf32> to vector<16xf32>
    %109 = vector.shape_cast %108 : vector<16xf32> to vector<16x1xf32>
    %cst_49 = arith.constant 6.400000e+01 : f32
    %110 = vector.broadcast %cst_49 : f32 to vector<16x1xf32>
    %111 = arith.divf %109, %110 : vector<16x1xf32>
    %112 = vector.broadcast %111 : vector<16x1xf32> to vector<16x64xf32>
    %113 = arith.subf %105, %112 : vector<16x64xf32>
    %114 = arith.mulf %113, %113 : vector<16x64xf32>
    %cst_50 = arith.constant dense<0.000000e+00> : vector<16xf32>
    %115 = vector.multi_reduction <add>, %114, %cst_50 [1] : vector<16x64xf32> to vector<16xf32>
    %116 = vector.shape_cast %115 : vector<16xf32> to vector<16x1xf32>
    %cst_51 = arith.constant 6.400000e+01 : f32
    %117 = vector.broadcast %cst_51 : f32 to vector<16x1xf32>
    %118 = arith.divf %116, %117 : vector<16x1xf32>
    %cst_52 = arith.constant 9.99999974E-6 : f32
    %119 = vector.broadcast %cst_52 : f32 to vector<16x1xf32>
    %120 = arith.addf %118, %119 : vector<16x1xf32>
    %121 = math.rsqrt %120 : vector<16x1xf32>
    %122 = vector.broadcast %106 : vector<1x64xf32> to vector<16x64xf32>
    %123 = vector.broadcast %121 : vector<16x1xf32> to vector<16x64xf32>
    %124 = arith.mulf %122, %123 : vector<16x64xf32>
    %125 = arith.mulf %105, %124 : vector<16x64xf32>
    %126 = vector.broadcast %111 : vector<16x1xf32> to vector<16x64xf32>
    %127 = arith.mulf %126, %124 : vector<16x64xf32>
    %128 = vector.broadcast %107 : vector<1x64xf32> to vector<16x64xf32>
    %129 = arith.subf %128, %127 : vector<16x64xf32>
    %130 = arith.addf %125, %129 : vector<16x64xf32>
    %131 = arith.truncf %130 : vector<16x64xf32> to vector<16x64xbf16>
    %132 = arith.negf %131 : vector<16x64xbf16>
    %133 = math.exp %132 : vector<16x64xbf16>
    %cst_53 = arith.constant 1.000000e+00 : bf16
    %134 = vector.broadcast %cst_53 : bf16 to vector<16x64xbf16>
    %135 = arith.addf %134, %133 : vector<16x64xbf16>
    %136 = arith.divf %134, %135 : vector<16x64xbf16>
    %137 = arith.mulf %131, %136 : vector<16x64xbf16>
    %c0_54 = arith.constant 0 : index
    %c0_55 = arith.constant 0 : index
    %138 = vector.load %arg16[%c0_54, %c0_55] : memref<64x16xbf16, #tpu.memory_space<vmem>>, vector<64x16xbf16>
    %cst_56 = arith.constant dense<0.000000e+00> : vector<16x16xf32>
    %139 = tpu.matmul %137, %138, %cst_56 {dimension_numbers = #tpu.dot_dimension_numbers<[1], [0], [0], [1], [0, 0, 1, 1], [], []>} : vector<16x64xbf16>, vector<64x16xbf16>, vector<16x16xf32> -> vector<16x16xf32>
    %c0_57 = arith.constant 0 : index
    %c0_58 = arith.constant 0 : index
    %140 = vector.load %arg17[%c0_57, %c0_58] : memref<1x16xf32, #tpu.memory_space<vmem>>, vector<1x16xf32>
    %141 = vector.broadcast %140 : vector<1x16xf32> to vector<16x16xf32>
    %142 = arith.addf %139, %141 : vector<16x16xf32>
    %c0_59 = arith.constant 0 : index
    %c0_60 = arith.constant 0 : index
    %143 = vector.load %arg18[%c0_59, %c0_60] : memref<16x16xf32, #tpu.memory_space<vmem>>, vector<16x16xf32>
    tpu.vector_store %arg18[%c0_59, %c0_60], %142 {strides = array<i32>} : memref<16x16xf32, #tpu.memory_space<vmem>>, vector<16x16xf32>,
    return
  }
  func.func @transform_0(%arg0: i32) -> (i32, i32) {
    %c0_i32 = arith.constant 0 : i32
    %c0_i32_0 = arith.constant 0 : i32
    return %arg0, %c0_i32 : i32, i32
  }
  func.func @transform_1(%arg0: i32) -> (i32, i32) {
    %c0_i32 = arith.constant 0 : i32
    %c0_i32_0 = arith.constant 0 : i32
    %c0_i32_1 = arith.constant 0 : i32
    return %c0_i32, %c0_i32_0 : i32, i32
  }
  func.func @transform_2(%arg0: i32) -> (i32, i32) {
    %c0_i32 = arith.constant 0 : i32
    %c0_i32_0 = arith.constant 0 : i32
    %c0_i32_1 = arith.constant 0 : i32
    return %c0_i32, %c0_i32_0 : i32, i32
  }
  func.func @transform_3(%arg0: i32) -> (i32, i32) {
    %c0_i32 = arith.constant 0 : i32
    %c0_i32_0 = arith.constant 0 : i32
    %c0_i32_1 = arith.constant 0 : i32
    return %c0_i32, %c0_i32_0 : i32, i32
  }
  func.func @transform_4(%arg0: i32) -> (i32, i32) {
    %c0_i32 = arith.constant 0 : i32
    %c0_i32_0 = arith.constant 0 : i32
    %c0_i32_1 = arith.constant 0 : i32
    return %c0_i32, %c0_i32_0 : i32, i32
  }
  func.func @transform_5(%arg0: i32) -> (i32, i32) {
    %c0_i32 = arith.constant 0 : i32
    %c0_i32_0 = arith.constant 0 : i32
    %c0_i32_1 = arith.constant 0 : i32
    return %c0_i32, %c0_i32_0 : i32, i32
  }
  func.func @transform_6(%arg0: i32) -> (i32, i32) {
    %c0_i32 = arith.constant 0 : i32
    %c0_i32_0 = arith.constant 0 : i32
    %c0_i32_1 = arith.constant 0 : i32
    return %c0_i32, %c0_i32_0 : i32, i32
  }
  func.func @transform_7(%arg0: i32) -> (i32, i32) {
    %c0_i32 = arith.constant 0 : i32
    %c0_i32_0 = arith.constant 0 : i32
    %c0_i32_1 = arith.constant 0 : i32
    return %c0_i32, %c0_i32_0 : i32, i32
  }
  func.func @transform_8(%arg0: i32) -> (i32, i32) {
    %c0_i32 = arith.constant 0 : i32
    %c0_i32_0 = arith.constant 0 : i32
    %c0_i32_1 = arith.constant 0 : i32
    return %c0_i32, %c0_i32_0 : i32, i32
  }
  func.func @transform_9(%arg0: i32) -> (i32, i32) {
    %c0_i32 = arith.constant 0 : i32
    %c0_i32_0 = arith.constant 0 : i32
    %c0_i32_1 = arith.constant 0 : i32
    return %c0_i32, %c0_i32_0 : i32, i32
  }
  func.func @transform_10(%arg0: i32) -> (i32, i32) {
    %c0_i32 = arith.constant 0 : i32
    %c0_i32_0 = arith.constant 0 : i32
    %c0_i32_1 = arith.constant 0 : i32
    return %c0_i32, %c0_i32_0 : i32, i32
  }
  func.func @transform_11(%arg0: i32) -> (i32, i32) {
    %c0_i32 = arith.constant 0 : i32
    %c0_i32_0 = arith.constant 0 : i32
    %c0_i32_1 = arith.constant 0 : i32
    return %c0_i32, %c0_i32_0 : i32, i32
  }
  func.func @transform_12(%arg0: i32) -> (i32, i32) {
    %c0_i32 = arith.constant 0 : i32
    %c0_i32_0 = arith.constant 0 : i32
    %c0_i32_1 = arith.constant 0 : i32
    return %c0_i32, %c0_i32_0 : i32, i32
  }
  func.func @transform_13(%arg0: i32) -> (i32, i32) {
    %c0_i32 = arith.constant 0 : i32
    %c0_i32_0 = arith.constant 0 : i32
    %c0_i32_1 = arith.constant 0 : i32
    return %c0_i32, %c0_i32_0 : i32, i32
  }
  func.func @transform_14(%arg0: i32) -> (i32, i32) {
    %c0_i32 = arith.constant 0 : i32
    %c0_i32_0 = arith.constant 0 : i32
    %c0_i32_1 = arith.constant 0 : i32
    return %c0_i32, %c0_i32_0 : i32, i32
  }
  func.func @transform_15(%arg0: i32) -> (i32, i32) {
    %c0_i32 = arith.constant 0 : i32
    %c0_i32_0 = arith.constant 0 : i32
    %c0_i32_1 = arith.constant 0 : i32
    return %c0_i32, %c0_i32_0 : i32, i32
  }
  func.func @transform_16(%arg0: i32) -> (i32, i32) {
    %c0_i32 = arith.constant 0 : i32
    %c0_i32_0 = arith.constant 0 : i32
    %c0_i32_1 = arith.constant 0 : i32
    return %c0_i32, %c0_i32_0 : i32, i32
  }
  func.func @transform_17(%arg0: i32) -> (i32, i32) {
    %c0_i32 = arith.constant 0 : i32
    %c0_i32_0 = arith.constant 0 : i32
    return %arg0, %c0_i32 : i32, i32
  }
}

</mosaic_0001>

<bundles_post_ra>
// kernel: tpu_custom_call.1
= control target key start
LH: loop header
LB: loop body
LE: loop exit
PB: predicated region body
PF: predicated region fallthrough
CT: control target
= control target key end

     0   :  { %s1227_s0 = inlined_call_operand.vmem [shape: f32[16,32], index: 0, kind: input, shape index: {}]   ;;  %s1228_s1 = inlined_call_operand.hbm [shape: f32[1,32], index: 1, kind: input, shape index: {}]   ;;  %s1229_s2 = inlined_call_operand.hbm [shape: f32[1,32], index: 2, kind: input, shape index: {}]   ;;  %s1230_s3 = inlined_call_operand.vmem [shape: bf16[32,32], index: 3, kind: input, shape index: {}]   ;;  %s1231_s4 = inlined_call_operand.hbm [shape: f32[1,32], index: 4, kind: input, shape index: {}]   ;;  %s1232_s5 = inlined_call_operand.hbm [shape: f32[1,32], index: 5, kind: input, shape index: {}]   ;;  %s1233_s6 = inlined_call_operand.hbm [shape: f32[1,32], index: 6, kind: input, shape index: {}]   ;;  %s1234_s7 = inlined_call_operand.vmem [shape: bf16[32,32], index: 7, kind: input, shape index: {}]   ;;  %s1235_s8 = inlined_call_operand.hbm [shape: f32[1,32], index: 8, kind: input, shape index: {}]   ;;  %s1236_s9 = inlined_call_operand.hbm [shape: f32[1,32], index: 9, kind: input, shape index: {}]   ;;  %s1237_s10 = inlined_call_operand.vmem [shape: f32[1,32], index: 10, kind: input, shape index: {}]   ;;  %s1238_s11 = inlined_call_operand.hbm [shape: bf16[32,64], index: 11, kind: input, shape index: {}]   ;;  %s1239_s12 = inlined_call_operand.vmem [shape: f32[1,64], index: 12, kind: input, shape index: {}]   ;;  %s1240_s13 = inlined_call_operand.vmem [shape: f32[1,64], index: 13, kind: input, shape index: {}]   ;;  %s1241_s14 = inlined_call_operand.vmem [shape: f32[1,64], index: 14, kind: input, shape index: {}]   ;;  %s1242_s15 = inlined_call_operand.vmem [shape: bf16[64,16], index: 15, kind: input, shape index: {}]   ;;  %s1243_s16 = inlined_call_operand.vmem [shape: f32[1,16], index: 16, kind: input, shape index: {}]   ;;  %s1244_s17 = inlined_call_operand.hbm [shape: f32[16,16], index: 17, kind: output, shape index: {}]  }
   0x1   :  { %1246 = sst [smem:[#allocation23_spill]] %s1227_s0 }
   0x2   :  { %1247 = sst [smem:[#allocation24_spill]] %s1228_s1 }
   0x3   :  { %22 = vsyncpa [#allocation3], 0 }
   0x4   :  { %23 = vsyncpa [#allocation6], 0 }
   0x5   :  { %24 = vsyncpa [#allocation9], 0 }
   0x6   :  { %25 = vsyncpa [#allocation12], 0 }
   0x7   :  { %26 = vsyncpa [#allocation15], 0 }
   0x8   :  { %27 = vsyncpa [#allocation4], 0  ;;  %s1012_s24 = smov [#allocation5]   ;;  %s1013_s26 = smov [#allocation8]  }
   0x9   :  { %s46_s25 = sshll.u32 %s1012_s24, 4  ;;  %s68_s27 = sshll.u32 %s1013_s26, 4  ;;  %s47_s25 = int_to_ptr.vmem [resolvable:$true] %s46_s25  ;;  %s69_s27 = int_to_ptr.vmem [resolvable:$true] %s68_s27 }
   0xa   :  { %s828_s28 = scalar_lea.vmem %s47_s25, 16  ;;  %s832_s29 = scalar_lea.vmem %s47_s25, 32 }
   0xb   :  { %p829_p0 = scmp.ne.s32.totalorder %s47_s25, %s828_s28  ;;  %p833_p1 = scmp.lt.s32.totalorder %s47_s25, %s47_s25 }
   0xc   :  { %p834_p2 = scmp.lt.s32.totalorder %s832_s29, %s828_s28 }
   0xe   :  { %p835_p3 = por %p834_p2, %p833_p1 }
  0x10   :  { %p836_p4 = pnand %p835_p3, %p829_p0 }
  0x12   :  { %839 = shalt.err (!%p836_p4)
}
  0x13   :  { %49 = dma.hbm_to_vmem [thread:$0]  %s1229_s2, 16, %s47_s25, [#allocation6]  }
  0x14   :  { %s848_s18 = scalar_lea.vmem %s69_s27, 16  ;;  %s852_s19 = scalar_lea.vmem %s69_s27, 32 }
  0x15   :  { %p849_p5 = scmp.ne.s32.totalorder %s69_s27, %s848_s18  ;;  %p853_p6 = scmp.lt.s32.totalorder %s69_s27, %s69_s27 }
  0x16   :  { %p854_p7 = scmp.lt.s32.totalorder %s852_s19, %s848_s18 }
  0x18   :  { %p855_p8 = por %p854_p7, %p853_p6 }
  0x1a   :  { %p856_p9 = pnand %p855_p8, %p849_p5 }
  0x1c   :  { %859 = shalt.err (!%p856_p9)
}
  0x1d   :  { %71 = dma.hbm_to_vmem [thread:$0]  %s1232_s5, 16, %s69_s27, [#allocation9]  }
  0x1e   :  { %s1014_s21 = smov [#allocation11]   ;;  %s1015_s23 = smov [#allocation2]  }
  0x1f   :  { %s90_s22 = sshll.u32 %s1014_s21, 4  ;;  %s36_s24 = sshll.u32 %s1015_s23, 4  ;;  %s91_s22 = int_to_ptr.vmem [resolvable:$true] %s90_s22  ;;  %s37_s24 = int_to_ptr.vmem [resolvable:$true] %s36_s24 }
  0x20   :  { %s868_s26 = scalar_lea.vmem %s91_s22, 16  ;;  %s872_s2 = scalar_lea.vmem %s91_s22, 32 }
  0x21   :  { %p869_p10 = scmp.ne.s32.totalorder %s91_s22, %s868_s26  ;;  %p873_p11 = scmp.lt.s32.totalorder %s91_s22, %s91_s22 }
  0x22   :  { %p874_p12 = scmp.lt.s32.totalorder %s872_s2, %s868_s26 }
  0x24   :  { %p875_p13 = por %p874_p12, %p873_p11 }
  0x26   :  { %p876_p0 = pnand %p875_p13, %p869_p10 }
  0x28   :  { %879 = shalt.err (!%p876_p0)
}
  0x29   :  { %93 = dma.hbm_to_vmem [thread:$0]  %s1235_s8, 16, %s91_s22, [#allocation12]  }
  0x2a   :  { %s888_s29 = scalar_lea.vmem %s37_s24, 16  ;;  %s892_s5 = scalar_lea.vmem %s37_s24, 32 }
  0x2b   :  { %p889_p1 = scmp.ne.s32.totalorder %s37_s24, %s888_s29  ;;  %p893_p2 = scmp.lt.s32.totalorder %s37_s24, %s37_s24 }
  0x2c   :  { %p894_p3 = scmp.lt.s32.totalorder %s892_s5, %s888_s29 }
  0x2e   :  { %p895_p4 = por %p894_p3, %p893_p2 }
  0x30   :  { %p896_p5 = pnand %p895_p4, %p889_p1 }
  0x32   :  { %899 = shalt.err (!%p896_p5)
}
  0x33   :  { %s1248_s30 = sld [smem:[#allocation24_spill]]  ;;  %s1016_s18 = smov [#allocation7]  }
  0x34   :  { %s58_s19 = sshll.u32 %s1016_s18, 4  ;;  %s1017_s1 = smov [#allocation10]   ;;  %s59_s19 = int_to_ptr.vmem [resolvable:$true] %s58_s19 }
  0x35   :  { %s78_s20 = sshll.u32 %s1017_s1, 4  ;;  %s908_s21 = scalar_lea.vmem %s59_s19, 16  ;;  %s79_s20 = int_to_ptr.vmem [resolvable:$true] %s78_s20 }
  0x36   :  { %p909_p6 = scmp.ne.s32.totalorder %s59_s19, %s908_s21  ;;  %s912_s8 = scalar_lea.vmem %s59_s19, 32 }
  0x37   :  { %p913_p7 = scmp.lt.s32.totalorder %s59_s19, %s59_s19  ;;  %p914_p8 = scmp.lt.s32.totalorder %s912_s8, %s908_s21 }
  0x39   :  { %39 = dma.hbm_to_vmem [thread:$0]  %s1248_s30, 16, %s37_s24, [#allocation3]  }
  0x3a   :  { %p915_p9 = por %p914_p8, %p913_p7 }
  0x3c   :  { %p916_p10 = pnand %p915_p9, %p909_p6 }
  0x3e   :  { %919 = shalt.err (!%p916_p10)
}
  0x3f   :  { %61 = dma.hbm_to_vmem [thread:$0]  %s1231_s4, 16, %s59_s19, [#allocation6]  }
  0x40   :  { %s928_s26 = scalar_lea.vmem %s79_s20, 16  ;;  %s932_s24 = scalar_lea.vmem %s79_s20, 32 }
  0x41   :  { %p929_p11 = scmp.ne.s32.totalorder %s79_s20, %s928_s26  ;;  %p933_p12 = scmp.lt.s32.totalorder %s79_s20, %s79_s20 }
  0x42   :  { %p934_p13 = scmp.lt.s32.totalorder %s932_s24, %s928_s26 }
  0x44   :  { %p935_p0 = por %p934_p13, %p933_p12 }
  0x46   :  { %p936_p1 = pnand %p935_p0, %p929_p11 }
  0x48   :  { %939 = shalt.err (!%p936_p1)
}
  0x49   :  { %81 = dma.hbm_to_vmem [thread:$0]  %s1233_s6, 16, %s79_s20, [#allocation9]  }
  0x4a   :  { %s1018_s28 = smov [#allocation13]   ;;  %s1019_s5 = smov [#allocation14]  }
  0x4b   :  { %s100_s29 = sshll.u32 %s1018_s28, 4  ;;  %s111_s27 = sshll.u32 %s1019_s5, 4  ;;  %s101_s29 = int_to_ptr.vmem [resolvable:$true] %s100_s29  ;;  %s112_s27 = int_to_ptr.vmem [resolvable:$true] %s111_s27 }
  0x4c   :  { %s948_s0 = scalar_lea.vmem %s101_s29, 16  ;;  %s952_s4 = scalar_lea.vmem %s101_s29, 32 }
  0x4d   :  { %p949_p2 = scmp.ne.s32.totalorder %s101_s29, %s948_s0  ;;  %p953_p3 = scmp.lt.s32.totalorder %s101_s29, %s101_s29 }
  0x4e   :  { %p954_p4 = scmp.lt.s32.totalorder %s952_s4, %s948_s0 }
  0x50   :  { %p955_p5 = por %p954_p4, %p953_p3 }
  0x52   :  { %p956_p6 = pnand %p955_p5, %p949_p2 }
  0x54   :  { %959 = shalt.err (!%p956_p6)
}
  0x55   :  { %103 = dma.hbm_to_vmem [thread:$0]  %s1236_s9, 16, %s101_s29, [#allocation12]  }
  0x56   :  { %s968_s19 = scalar_lea.vmem %s112_s27, 256  ;;  %p973_p8 = scmp.lt.s32.totalorder %s112_s27, %s112_s27 }
  0x57   :  { %p969_p7 = scmp.ne.s32.totalorder %s112_s27, %s968_s19  ;;  %p974_p9 = scmp.lt.s32.totalorder %s968_s19, %s968_s19 }
  0x59   :  { %p975_p10 = por %p974_p9, %p973_p8 }
  0x5b   :  { %p976_p11 = pnand %p975_p10, %p969_p7 }
  0x5d   :  { %979 = shalt.err (!%p976_p11)
}
  0x5e   :  { %s1020_s6 = smov 64   ;;  %s1021_s1 = smov 4  }
  0x5f   :  { %117 = dma.hbm_to_vmem [thread:$0]  %s1238_s11, 256, %s112_s27, [#allocation15], %s1020_s6, %s1020_s6, %s1021_s1  }
  0x60   :  { %1000 = dma.done.wait [#allocation3], 16  }
  0x61   :  { %1001 = vsyncadd [#allocation3], 4294967280 }
  0x62   :  { %1002 = dma.done.wait [#allocation6], 32  }
  0x63   :  { %1003 = vsyncadd [#allocation6], 4294967264 }
  0x64   :  { %1004 = dma.done.wait [#allocation9], 32  }
  0x65   :  { %1005 = vsyncadd [#allocation9], 4294967264 }
  0x66   :  { %1006 = dma.done.wait [#allocation12], 32  }
  0x67   :  { %1007 = vsyncadd [#allocation12], 4294967264 }
  0x68   :  { %1008 = dma.done.wait [#allocation15], 256  }
  0x69   :  { %1009 = vsyncadd [#allocation15], 4294967040  ;;  %vm158_vm0 = vcmask 261120   ;;  %s1249_s22 = sld [smem:[#allocation23_spill]]  ;;  %v782_v14 = vld [vmem:[%s1230_s3 + $0x8] sm:$0xff]   ;;  %v1022_v15 = vmov 0.0  }
  0x6a   :  { %731 = vmatprep.subr.bf16.mxu0 %v1022_v15  ;;  %vm1023_vm1 = vmmov 0   ;;  %v783_v16 = vld [vmem:[%s1230_s3] sm:$0xff]   ;;  %739 = vmatprep.subr.bf16.mxu1 %v1022_v15  ;;  %v784_v57 = vld [vmem:[%s1234_s7 + $0x8] sm:$0xff]   ;;  %vm524_vm2 = vcmask 523264   ;;  %vm664_vm3 = vcmask 130048  }
  0x6b   :  { %735 = vmatprep.mubr.msk.bf16.mxu0 %vm1023_vm1, %v1022_v15  ;;  %732 = vmatpush3.bf16.msra.mxu0 %v782_v14  ;;  %v688_v23 = vld [vmem:[#allocation2] ss:$0 sm:$0xff]  ;;  %v689_v28 = vld [vmem:[#allocation5] ss:$0 sm:$0xff]  ;;  %v690_v38 = vld [vmem:[#allocation7] ss:$0 sm:$0xff] }
  0x6c   :  { %733 = vmatprep.subr.bf16.mxu0 %v1022_v15  ;;  %743 = vmatprep.mubr.msk.bf16.mxu1 %vm1023_vm1, %v1022_v15  ;;  %v785_v58 = vld [vmem:[%s1234_s7] sm:$0xff]  }
  0x6d   :  { %740 = vmatpush3.bf16.msra.mxu1 %v784_v57 }
  0x6e   :  { %741 = vmatprep.subr.bf16.mxu1 %v1022_v15 }
  0x6f   :  { %v154_v0 = vld [vmem:[%s1249_s22] sm:$0xff]  ;;  %v155_v1 = vld [vmem:[%s1249_s22 + $0x8] sm:$0xff]  ;;  %734 = vmatpush3.bf16.msra.mxu0 %v783_v16  ;;  %s1024_s22 = smov [#allocation16]  }
  0x70   :  { %v159_v2 = vsel %vm158_vm0, %v154_v0, 0.0  ;;  %v162_v3 = vsel %vm158_vm0, %v155_v1, 0.0  ;;  %747 = vmatprep.subr.bf16.mxu0 %v1022_v15  ;;  %s672_s23 = sshll.u32 %s1024_s22, 4  ;;  %s673_s23 = int_to_ptr.vmem [resolvable:$true] %s672_s23 }
  0x71   :  { %160 = vadd.xlane.f32.xlu0 %v159_v2  ;;  %742 = vmatpush3.bf16.msra.mxu1 %v785_v58  ;;  %s980_s26 = scalar_lea.vmem %s673_s23, 256  ;;  %p985_p13 = scmp.lt.s32.totalorder %s673_s23, %s673_s23 }
  0x72   :  { %755 = vmatprep.subr.bf16.mxu1 %v1022_v15  ;;  %p981_p12 = scmp.ne.s32.totalorder %s673_s23, %s980_s26  ;;  %p986_p0 = scmp.lt.s32.totalorder %s980_s26, %s980_s26 }
  0x74   :  { %p987_p1 = por %p986_p0, %p985_p13 }
  0x75   :  { %163 = vadd.xlane.f32.xlu0 %v162_v3 }
  0x76   :  { %p988_p2 = pnand %p987_p1, %p981_p12 }
  0xfa   :  { %v161_v4 = vpop.xlane.xlu0 %160 }
  0xfb   :  { %v166_v5 = vmul.f32 0.03125, %v161_v4 }
  0xfd   :  { %v168_v6 = vsub.f32 %v154_v0, %v166_v5 }
  0xfe   :  { %v164_v7 = vpop.xlane.xlu0 %163 }
  0xff   :  { %v167_v8 = vmul.f32 0.03125, %v164_v7  ;;  %v170_v9 = vmul.f32 %v168_v6, %v168_v6  ;;  %v695_v6 = vld [vmem:[#allocation10] ss:$0 sm:$0xff] }
 0x101   :  { %v169_v10 = vsub.f32 %v155_v1, %v167_v8  ;;  %v172_v11 = vsel %vm158_vm0, %v170_v9, 0.0 }
 0x102   :  { %173 = vadd.xlane.f32.xlu1 %v172_v11 }
 0x103   :  { %v171_v12 = vmul.f32 %v169_v10, %v169_v10 }
 0x105   :  { %v175_v13 = vsel %vm158_vm0, %v171_v12, 0.0 }
 0x106   :  { %176 = vadd.xlane.f32.xlu1 %v175_v13 }
 0x18b   :  { %v174_v17 = vpop.xlane.xlu1 %173 }
 0x18c   :  { %v178_v18 = vmul.f32 0.03125, %v174_v17 }
 0x18e   :  { %v180_v19 = vadd.f32 1e-05, %v178_v18 }
 0x18f   :  { %v177_v20 = vpop.xlane.xlu1 %176 }
 0x190   :  { %792 = vrsqrt.f32 %v180_v19  ;;  %v179_v21 = vmul.f32 0.03125, %v177_v20 }
 0x192   :  { %v181_v22 = vadd.f32 1e-05, %v179_v21 }
 0x194   :  { %794 = vrsqrt.f32 %v181_v22 }
 0x19d   :  { %v793_v24 = vpop.eup %792 }
 0x19e   :  { %v190_v25 = vmul.f32 %v793_v24, %v688_v23 }
 0x1a0   :  { %v194_v26 = vmul.f32 %v190_v25, %v166_v5  ;;  %v192_v32 = vmul.f32 %v190_v25, %v154_v0 }
 0x1a1   :  { %v795_v27 = vpop.eup %794 }
 0x1a2   :  { %v191_v29 = vmul.f32 %v795_v27, %v688_v23  ;;  %v202_v31 = vsub.f32 %v689_v28, %v194_v26  ;;  %v697_v23 = vld [vmem:[#allocation11] ss:$0 sm:$0xff] }
 0x1a4   :  { %v195_v30 = vmul.f32 %v191_v29, %v167_v8  ;;  %v193_v33 = vmul.f32 %v191_v29, %v155_v1  ;;  %v204_v35 = vadd.f32 %v202_v31, %v192_v32  ;;  %v694_v1 = vld [vmem:[#allocation8] ss:$0 sm:$0xff] }
 0x1a6   :  { %v203_v34 = vsub.f32 %v689_v28, %v195_v30 }
 0x1a8   :  { %v205_v36 = vadd.f32 %v203_v34, %v193_v33 }
 0x1aa   :  { %v206_v37 = vpack.c.bf16 %v205_v36, %v204_v35 }
 0x1ac   :  { %736 = vmatmul.mubr.msk.bf16.vlgmr.msra.gmra.mxu0 %vm158_vm0, %v206_v37 }
 0x1ad   :  { %751 = vmatprep.mubr.msk.bf16.mxu0 %vm1023_vm1, %v1022_v15 }
 0x26c   :  { %v267_v39 = vpop.f32.mrf.mxu0 }
 0x26d   :  { %v268_v40 = vadd.f32 %v690_v38, %v267_v39 }
 0x26e   :  { %v737_v41 = vpop.f32.mrf.mxu0 }
 0x26f   :  { %v276_v42 = vsel %vm158_vm0, %v268_v40, 0.0 }
 0x270   :  { %277 = vadd.xlane.f32.xlu0 %v276_v42  ;;  %v270_v43 = vpop.f32.mrf.mxu0  ;;  %v786_v42 = vld [vmem:[#allocation14 + $0x8] sm:$0xff]  }
 0x271   :  { %v271_v44 = vadd.f32 %v690_v38, %v270_v43  ;;  %748 = vmatpush3.bf16.msra.mxu0 %v786_v42  ;;  %v787_v43 = vld [vmem:[#allocation14] sm:$0xff]  }
 0x272   :  { %v738_v45 = vpop.f32.mrf.mxu0  ;;  %749 = vmatprep.subr.bf16.mxu0 %v1022_v15 }
 0x273   :  { %v279_v46 = vsel %vm158_vm0, %v271_v44, 0.0 }
 0x274   :  { %280 = vadd.xlane.f32.xlu1 %v279_v46 }
 0x275   :  { %750 = vmatpush3.bf16.msra.mxu0 %v787_v43 }
 0x2f9   :  { %v278_v47 = vpop.xlane.xlu0 %277 }
 0x2fa   :  { %v282_v48 = vmul.f32 0.03125, %v278_v47 }
 0x2fc   :  { %v284_v49 = vsub.f32 %v268_v40, %v282_v48 }
 0x2fd   :  { %v281_v50 = vpop.xlane.xlu1 %280 }
 0x2fe   :  { %v283_v51 = vmul.f32 0.03125, %v281_v50  ;;  %v286_v52 = vmul.f32 %v284_v49, %v284_v49  ;;  %v701_v50 = vld [vmem:[#allocation13] ss:$0 sm:$0xff] }
 0x300   :  { %v285_v53 = vsub.f32 %v271_v44, %v283_v51  ;;  %v288_v54 = vsel %vm158_vm0, %v286_v52, 0.0 }
 0x301   :  { %289 = vadd.xlane.f32.xlu0 %v288_v54 }
 0x302   :  { %v287_v55 = vmul.f32 %v285_v53, %v285_v53 }
 0x304   :  { %v291_v56 = vsel %vm158_vm0, %v287_v55, 0.0  ;;  %v702_v55 = vld [vmem:[%s1237_s10] ss:$0 sm:$0xff] }
 0x305   :  { %292 = vadd.xlane.f32.xlu1 %v291_v56 }
 0x38a   :  { %v290_v59 = vpop.xlane.xlu0 %289 }
 0x38b   :  { %v294_v60 = vmul.f32 0.03125, %v290_v59 }
 0x38d   :  { %v296_v61 = vadd.f32 1e-05, %v294_v60 }
 0x38e   :  { %v293_v62 = vpop.xlane.xlu1 %292 }
 0x38f   :  { %796 = vrsqrt.f32 %v296_v61  ;;  %v295_v63 = vmul.f32 0.03125, %v293_v62 }
 0x391   :  { %v297_v0 = vadd.f32 1e-05, %v295_v63 }
 0x393   :  { %798 = vrsqrt.f32 %v297_v0 }
 0x39c   :  { %v797_v2 = vpop.eup %796 }
 0x39d   :  { %v306_v3 = vmul.f32 %v797_v2, %v694_v1 }
 0x39f   :  { %v310_v4 = vmul.f32 %v306_v3, %v282_v48  ;;  %v308_v10 = vmul.f32 %v306_v3, %v268_v40 }
 0x3a0   :  { %v799_v5 = vpop.eup %798 }
 0x3a1   :  { %v307_v7 = vmul.f32 %v799_v5, %v694_v1  ;;  %v318_v9 = vsub.f32 %v695_v6, %v310_v4 }
 0x3a3   :  { %v311_v8 = vmul.f32 %v307_v7, %v283_v51  ;;  %v309_v11 = vmul.f32 %v307_v7, %v271_v44  ;;  %v320_v13 = vadd.f32 %v318_v9, %v308_v10  ;;  %v704_v7 = vld [vmem:[%s1239_s12] ss:$0 sm:$0xff] }
 0x3a5   :  { %v319_v12 = vsub.f32 %v695_v6, %v311_v8 }
 0x3a7   :  { %v321_v14 = vadd.f32 %v319_v12, %v309_v11 }
 0x3a9   :  { %v322_v16 = vpack.c.bf16 %v321_v14, %v320_v13 }
 0x3ab   :  { %v696_v17 = vmul.bf16 3216621497, %v322_v16 }
 0x3ad   :  { %800 = vpow.bf16 %v696_v17 }
 0x3bb   :  { %v801_v18 = vpop.eup %800 }
 0x3bc   :  { %v327_v19 = vadd.bf16 1065369472, %v801_v18 }
 0x3be   :  { %802 = vrcp.bf16 %v327_v19 }
 0x3cc   :  { %v803_v20 = vpop.eup %802 }
 0x3cd   :  { %v329_v21 = vmul.bf16 1065369472, %v803_v20 }
 0x3cf   :  { %v330_v22 = vmul.bf16 %v329_v21, %v322_v16 }
 0x3d1   :  { %744 = vmatmul.mubr.msk.bf16.vlgmr.msra.gmra.mxu1 %vm158_vm0, %v330_v22 }
 0x3d2   :  { %763 = vmatprep.mubr.msk.bf16.mxu1 %vm1023_vm1, %v1022_v15 }
 0x491   :  { %v391_v24 = vpop.f32.mrf.mxu1 }
 0x492   :  { %v392_v25 = vadd.f32 %v697_v23, %v391_v24 }
 0x493   :  { %v745_v26 = vpop.f32.mrf.mxu1 }
 0x494   :  { %v400_v27 = vsel %vm158_vm0, %v392_v25, 0.0 }
 0x495   :  { %401 = vadd.xlane.f32.xlu0 %v400_v27  ;;  %v394_v28 = vpop.f32.mrf.mxu1  ;;  %v788_v27 = vld [vmem:[%s1242_s15 + $0x18] sm:$0xff]  }
 0x496   :  { %v395_v29 = vadd.f32 %v697_v23, %v394_v28  ;;  %756 = vmatpush3.bf16.msra.mxu1 %v788_v27  ;;  %v789_v28 = vld [vmem:[%s1242_s15 + $0x10] sm:$0xff]  }
 0x497   :  { %v746_v30 = vpop.f32.mrf.mxu1  ;;  %757 = vmatprep.subr.bf16.mxu1 %v1022_v15 }
 0x498   :  { %v403_v31 = vsel %vm158_vm0, %v395_v29, 0.0  ;;  %v791_v30 = vld [vmem:[%s1242_s15] sm:$0xff]  }
 0x499   :  { %404 = vadd.xlane.f32.xlu1 %v403_v31 }
 0x49a   :  { %758 = vmatpush3.bf16.msra.mxu1 %v789_v28 }
 0x49b   :  { %759 = vmatprep.subr.bf16.mxu1 %v1022_v15 }
 0x51e   :  { %v402_v32 = vpop.xlane.xlu0 %401 }
 0x51f   :  { %v406_v33 = vmul.f32 0.03125, %v402_v32 }
 0x521   :  { %v408_v34 = vsub.f32 %v392_v25, %v406_v33 }
 0x522   :  { %v405_v35 = vpop.xlane.xlu1 %404 }
 0x523   :  { %v407_v36 = vmul.f32 0.03125, %v405_v35  ;;  %v410_v37 = vmul.f32 %v408_v34, %v408_v34 }
 0x525   :  { %v409_v38 = vsub.f32 %v395_v29, %v407_v36  ;;  %v412_v39 = vsel %vm158_vm0, %v410_v37, 0.0  ;;  %v708_v37 = vld [vmem:[%s1240_s13] ss:$0 sm:$0xff] }
 0x526   :  { %413 = vadd.xlane.f32.xlu0 %v412_v39 }
 0x527   :  { %v411_v40 = vmul.f32 %v409_v38, %v409_v38 }
 0x529   :  { %v415_v41 = vsel %vm158_vm0, %v411_v40, 0.0 }
 0x52a   :  { %416 = vadd.xlane.f32.xlu1 %v415_v41 }
 0x5af   :  { %v414_v44 = vpop.xlane.xlu0 %413 }
 0x5b0   :  { %v418_v45 = vmul.f32 0.03125, %v414_v44 }
 0x5b2   :  { %v420_v46 = vadd.f32 1e-05, %v418_v45 }
 0x5b3   :  { %v417_v47 = vpop.xlane.xlu1 %416 }
 0x5b4   :  { %804 = vrsqrt.f32 %v420_v46  ;;  %v419_v48 = vmul.f32 0.03125, %v417_v47 }
 0x5b6   :  { %v421_v49 = vadd.f32 1e-05, %v419_v48 }
 0x5b8   :  { %806 = vrsqrt.f32 %v421_v49 }
 0x5c1   :  { %v805_v51 = vpop.eup %804 }
 0x5c2   :  { %v430_v52 = vmul.f32 %v805_v51, %v701_v50 }
 0x5c4   :  { %v434_v53 = vmul.f32 %v430_v52, %v406_v33  ;;  %v432_v59 = vmul.f32 %v430_v52, %v392_v25 }
 0x5c5   :  { %v807_v54 = vpop.eup %806 }
 0x5c6   :  { %v431_v56 = vmul.f32 %v807_v54, %v701_v50  ;;  %v442_v58 = vsub.f32 %v702_v55, %v434_v53 }
 0x5c8   :  { %v435_v57 = vmul.f32 %v431_v56, %v407_v36  ;;  %v433_v60 = vmul.f32 %v431_v56, %v395_v29  ;;  %v444_v62 = vadd.f32 %v442_v58, %v432_v59  ;;  %v790_v29 = vld [vmem:[%s1242_s15 + $0x8] sm:$0xff]  }
 0x5c9   :  { %760 = vmatpush3.bf16.msra.mxu1 %v790_v29 }
 0x5ca   :  { %v443_v61 = vsub.f32 %v702_v55, %v435_v57  ;;  %761 = vmatprep.subr.bf16.mxu1 %v1022_v15  ;;  %v709_v15 = vld [vmem:[%s1241_s14] ss:$0 sm:$0xff] }
 0x5cb   :  { %v711_v57 = vld [vmem:[%s1243_s16] ss:$0 sm:$0xff] }
 0x5cc   :  { %v445_v63 = vadd.f32 %v443_v61, %v433_v60 }
 0x5cd   :  { %762 = vmatpush3.bf16.msra.mxu1 %v791_v30 }
 0x5ce   :  { %v446_v0 = vpack.c.bf16 %v445_v63, %v444_v62 }
 0x5d0   :  { %v703_v1 = vmul.bf16 3216621497, %v446_v0 }
 0x5d2   :  { %808 = vpow.bf16 %v703_v1 }
 0x5e0   :  { %v809_v2 = vpop.eup %808 }
 0x5e1   :  { %v451_v3 = vadd.bf16 1065369472, %v809_v2 }
 0x5e3   :  { %810 = vrcp.bf16 %v451_v3 }
 0x5f1   :  { %v811_v4 = vpop.eup %810 }
 0x5f2   :  { %v453_v5 = vmul.bf16 1065369472, %v811_v4 }
 0x5f4   :  { %v454_v6 = vmul.bf16 %v453_v5, %v446_v0 }
 0x5f6   :  { %752 = vmatmul.mubr.msk.bf16.vlgmr.msra.gmra.mxu0 %vm158_vm0, %v454_v6 }
 0x6b6   :  { %v515_v8 = vpop.f32.mrf.mxu0 }
 0x6b7   :  { %v516_v9 = vadd.f32 %v704_v7, %v515_v8 }
 0x6b8   :  { %v753_v10 = vpop.f32.mrf.mxu0 }
 0x6b9   :  { %v525_v11 = vsel %vm524_vm2, %v516_v9, 0.0 }
 0x6ba   :  { %526 = vadd.xlane.f32.xlu0 %v525_v11  ;;  %v518_v12 = vpop.f32.mrf.mxu0 }
 0x6bb   :  { %v519_v13 = vadd.f32 %v704_v7, %v518_v12 }
 0x6bc   :  { %v754_v14 = vpop.f32.mrf.mxu0 }
 0x6bd   :  { %v528_v16 = vsel %vm524_vm2, %v519_v13, 0.0 }
 0x6be   :  { %529 = vadd.xlane.f32.xlu1 %v528_v16 }
 0x743   :  { %v527_v17 = vpop.xlane.xlu0 %526 }
 0x744   :  { %v532_v18 = vmul.f32 0.015625, %v527_v17 }
 0x746   :  { %v534_v19 = vsub.f32 %v516_v9, %v532_v18 }
 0x747   :  { %v530_v20 = vpop.xlane.xlu1 %529 }
 0x748   :  { %v533_v21 = vmul.f32 0.015625, %v530_v20  ;;  %v536_v22 = vmul.f32 %v534_v19, %v534_v19 }
 0x74a   :  { %v535_v23 = vsub.f32 %v519_v13, %v533_v21  ;;  %v538_v24 = vsel %vm524_vm2, %v536_v22, 0.0 }
 0x74b   :  { %539 = vadd.xlane.f32.xlu0 %v538_v24 }
 0x74c   :  { %v537_v25 = vmul.f32 %v535_v23, %v535_v23 }
 0x74e   :  { %v541_v26 = vsel %vm524_vm2, %v537_v25, 0.0 }
 0x74f   :  { %542 = vadd.xlane.f32.xlu1 %v541_v26 }
 0x7d4   :  { %v540_v31 = vpop.xlane.xlu0 %539 }
 0x7d5   :  { %v544_v32 = vmul.f32 0.015625, %v540_v31 }
 0x7d7   :  { %v546_v33 = vadd.f32 1e-05, %v544_v32 }
 0x7d8   :  { %v543_v34 = vpop.xlane.xlu1 %542 }
 0x7d9   :  { %812 = vrsqrt.f32 %v546_v33  ;;  %v545_v35 = vmul.f32 0.015625, %v543_v34 }
 0x7db   :  { %v547_v36 = vadd.f32 1e-05, %v545_v35 }
 0x7dd   :  { %814 = vrsqrt.f32 %v547_v36 }
 0x7e6   :  { %v813_v38 = vpop.eup %812 }
 0x7e7   :  { %v556_v39 = vmul.f32 %v813_v38, %v708_v37 }
 0x7e9   :  { %v560_v40 = vmul.f32 %v556_v39, %v532_v18  ;;  %v558_v45 = vmul.f32 %v556_v39, %v516_v9 }
 0x7ea   :  { %v815_v41 = vpop.eup %814 }
 0x7eb   :  { %v557_v42 = vmul.f32 %v815_v41, %v708_v37  ;;  %v568_v44 = vsub.f32 %v709_v15, %v560_v40 }
 0x7ed   :  { %v561_v43 = vmul.f32 %v557_v42, %v533_v21  ;;  %v559_v46 = vmul.f32 %v557_v42, %v519_v13  ;;  %v570_v48 = vadd.f32 %v568_v44, %v558_v45 }
 0x7ef   :  { %v569_v47 = vsub.f32 %v709_v15, %v561_v43 }
 0x7f1   :  { %v571_v49 = vadd.f32 %v569_v47, %v559_v46 }
 0x7f3   :  { %v572_v50 = vpack.c.bf16 %v571_v49, %v570_v48 }
 0x7f5   :  { %v710_v51 = vmul.bf16 3216621497, %v572_v50 }
 0x7f7   :  { %816 = vpow.bf16 %v710_v51 }
 0x805   :  { %v817_v52 = vpop.eup %816 }
 0x806   :  { %v577_v53 = vadd.bf16 1065369472, %v817_v52 }
 0x808   :  { %818 = vrcp.bf16 %v577_v53 }
 0x816   :  { %v819_v54 = vpop.eup %818 }
 0x817   :  { %v579_v55 = vmul.bf16 1065369472, %v819_v54 }
 0x819   :  { %v580_v56 = vmul.bf16 %v579_v55, %v572_v50 }
 0x81b   :  { %764 = vmatmul.mubr.msk.bf16.vlgmr.msra.gmra.mxu1 %vm524_vm2, %v580_v56 }
 0x8db   :  { %v657_v58 = vpop.f32.mrf.mxu1 }
 0x8dc   :  { %v658_v59 = vadd.f32 %v711_v57, %v657_v58 }
 0x8dd   :  { %v765_v60 = vpop.f32.mrf.mxu1 }
 0x8de   :  { %665 = vst.msk [vmem:[#allocation16] sm:$0xff] %vm664_vm3, %v658_v59 }
 0x8df   :  { %v660_v61 = vpop.f32.mrf.mxu1 }
 0x8e0   :  { %v661_v62 = vadd.f32 %v711_v57, %v660_v61 }
 0x8e1   :  { %v766_v63 = vpop.f32.mrf.mxu1 }
 0x8e2   :  { %666 = vst.msk [vmem:[#allocation16 + $0x8] sm:$0xff] %vm664_vm3, %v661_v62 }
 0x8e3   :  { %991 = shalt.err (!%p988_p2)
}
 0x8e4   :  { %s1025_s16 = smov 128   ;;  %s1026_s11 = smov 8  }
 0x8e5   :  { %678 = dma.vmem_to_hbm [thread:$0]  %s673_s23, 256, %s1244_s17, [#allocation4], %s1025_s16, %s1025_s16, %s1026_s11  }
 0x8e6   :  { %1010 = dma.done.wait [#allocation4], 256  }
 0x8e7   :  { %1011 = vsyncadd [#allocation4], 4294967040 }
 0x8e8   :  { %682 = vsyncpa [#allocation3], 1 }
 0x8e9   :  { %683 = vsyncpa [#allocation6], 1 }
 0x8ea   :  { %684 = vsyncpa [#allocation9], 1 }
 0x8eb   :  { %685 = vsyncpa [#allocation12], 1 }
 0x8ec   :  { %686 = vsyncpa [#allocation15], 1 }
 0x8ed   :  { %687 = vsyncpa [#allocation4], 1 }

// kernel: tpu_custom_call.1
= control target key start
LH: loop header
LB: loop body
LE: loop exit
PB: predicated region body
PF: predicated region fallthrough
CT: control target
= control target key end

     0   :  { %s1227_s0 = inlined_call_operand.vmem [shape: f32[16,32], index: 0, kind: input, shape index: {}]   ;;  %s1228_s1 = inlined_call_operand.hbm [shape: f32[1,32], index: 1, kind: input, shape index: {}]   ;;  %s1229_s2 = inlined_call_operand.hbm [shape: f32[1,32], index: 2, kind: input, shape index: {}]   ;;  %s1230_s3 = inlined_call_operand.vmem [shape: bf16[32,32], index: 3, kind: input, shape index: {}]   ;;  %s1231_s4 = inlined_call_operand.hbm [shape: f32[1,32], index: 4, kind: input, shape index: {}]   ;;  %s1232_s5 = inlined_call_operand.hbm [shape: f32[1,32], index: 5, kind: input, shape index: {}]   ;;  %s1233_s6 = inlined_call_operand.hbm [shape: f32[1,32], index: 6, kind: input, shape index: {}]   ;;  %s1234_s7 = inlined_call_operand.vmem [shape: bf16[32,32], index: 7, kind: input, shape index: {}]   ;;  %s1235_s8 = inlined_call_operand.hbm [shape: f32[1,32], index: 8, kind: input, shape index: {}]   ;;  %s1236_s9 = inlined_call_operand.hbm [shape: f32[1,32], index: 9, kind: input, shape index: {}]   ;;  %s1237_s10 = inlined_call_operand.vmem [shape: f32[1,32], index: 10, kind: input, shape index: {}]   ;;  %s1238_s11 = inlined_call_operand.hbm [shape: bf16[32,64], index: 11, kind: input, shape index: {}]   ;;  %s1239_s12 = inlined_call_operand.vmem [shape: f32[1,64], index: 12, kind: input, shape index: {}]   ;;  %s1240_s13 = inlined_call_operand.vmem [shape: f32[1,64], index: 13, kind: input, shape index: {}]   ;;  %s1241_s14 = inlined_call_operand.vmem [shape: f32[1,64], index: 14, kind: input, shape index: {}]   ;;  %s1242_s15 = inlined_call_operand.vmem [shape: bf16[64,16], index: 15, kind: input, shape index: {}]   ;;  %s1243_s16 = inlined_call_operand.vmem [shape: f32[1,16], index: 16, kind: input, shape index: {}]   ;;  %s1244_s17 = inlined_call_operand.hbm [shape: f32[16,16], index: 17, kind: output, shape index: {}]  }
   0x1   :  { %1246 = sst [smem:[#allocation23_spill]] %s1227_s0 }
   0x2   :  { %1247 = sst [smem:[#allocation24_spill]] %s1228_s1 }
   0x3   :  { %22 = vsyncpa [#allocation3], 0 }
   0x4   :  { %23 = vsyncpa [#allocation6], 0 }
   0x5   :  { %24 = vsyncpa [#allocation9], 0 }
   0x6   :  { %25 = vsyncpa [#allocation12], 0 }
   0x7   :  { %26 = vsyncpa [#allocation15], 0 }
   0x8   :  { %27 = vsyncpa [#allocation4], 0  ;;  %s1012_s24 = smov [#allocation5]   ;;  %s1013_s26 = smov [#allocation8]  }
   0x9   :  { %s46_s25 = sshll.u32 %s1012_s24, 4  ;;  %s68_s27 = sshll.u32 %s1013_s26, 4  ;;  %s47_s25 = int_to_ptr.vmem [resolvable:$true] %s46_s25  ;;  %s69_s27 = int_to_ptr.vmem [resolvable:$true] %s68_s27 }
   0xa   :  { %s828_s28 = scalar_lea.vmem %s47_s25, 16  ;;  %s832_s29 = scalar_lea.vmem %s47_s25, 32 }
   0xb   :  { %p829_p0 = scmp.ne.s32.totalorder %s47_s25, %s828_s28  ;;  %p833_p1 = scmp.lt.s32.totalorder %s47_s25, %s47_s25 }
   0xc   :  { %p834_p2 = scmp.lt.s32.totalorder %s832_s29, %s828_s28 }
   0xe   :  { %p835_p3 = por %p834_p2, %p833_p1 }
  0x10   :  { %p836_p4 = pnand %p835_p3, %p829_p0 }
  0x12   :  { %839 = shalt.err (!%p836_p4)
}
  0x13   :  { %49 = dma.hbm_to_vmem [thread:$0]  %s1229_s2, 16, %s47_s25, [#allocation6]  }
  0x14   :  { %s848_s18 = scalar_lea.vmem %s69_s27, 16  ;;  %s852_s19 = scalar_lea.vmem %s69_s27, 32 }
  0x15   :  { %p849_p5 = scmp.ne.s32.totalorder %s69_s27, %s848_s18  ;;  %p853_p6 = scmp.lt.s32.totalorder %s69_s27, %s69_s27 }
  0x16   :  { %p854_p7 = scmp.lt.s32.totalorder %s852_s19, %s848_s18 }
  0x18   :  { %p855_p8 = por %p854_p7, %p853_p6 }
  0x1a   :  { %p856_p9 = pnand %p855_p8, %p849_p5 }
  0x1c   :  { %859 = shalt.err (!%p856_p9)
}
  0x1d   :  { %71 = dma.hbm_to_vmem [thread:$0]  %s1232_s5, 16, %s69_s27, [#allocation9]  }
  0x1e   :  { %s1014_s21 = smov [#allocation11]   ;;  %s1015_s23 = smov [#allocation2]  }
  0x1f   :  { %s90_s22 = sshll.u32 %s1014_s21, 4  ;;  %s36_s24 = sshll.u32 %s1015_s23, 4  ;;  %s91_s22 = int_to_ptr.vmem [resolvable:$true] %s90_s22  ;;  %s37_s24 = int_to_ptr.vmem [resolvable:$true] %s36_s24 }
  0x20   :  { %s868_s26 = scalar_lea.vmem %s91_s22, 16  ;;  %s872_s2 = scalar_lea.vmem %s91_s22, 32 }
  0x21   :  { %p869_p10 = scmp.ne.s32.totalorder %s91_s22, %s868_s26  ;;  %p873_p11 = scmp.lt.s32.totalorder %s91_s22, %s91_s22 }
  0x22   :  { %p874_p12 = scmp.lt.s32.totalorder %s872_s2, %s868_s26 }
  0x24   :  { %p875_p13 = por %p874_p12, %p873_p11 }
  0x26   :  { %p876_p0 = pnand %p875_p13, %p869_p10 }
  0x28   :  { %879 = shalt.err (!%p876_p0)
}
  0x29   :  { %93 = dma.hbm_to_vmem [thread:$0]  %s1235_s8, 16, %s91_s22, [#allocation12]  }
  0x2a   :  { %s888_s29 = scalar_lea.vmem %s37_s24, 16  ;;  %s892_s5 = scalar_lea.vmem %s37_s24, 32 }
  0x2b   :  { %p889_p1 = scmp.ne.s32.totalorder %s37_s24, %s888_s29  ;;  %p893_p2 = scmp.lt.s32.totalorder %s37_s24, %s37_s24 }
  0x2c   :  { %p894_p3 = scmp.lt.s32.totalorder %s892_s5, %s888_s29 }
  0x2e   :  { %p895_p4 = por %p894_p3, %p893_p2 }
  0x30   :  { %p896_p5 = pnand %p895_p4, %p889_p1 }
  0x32   :  { %899 = shalt.err (!%p896_p5)
}
  0x33   :  { %s1248_s30 = sld [smem:[#allocation24_spill]]  ;;  %s1016_s18 = smov [#allocation7]  }
  0x34   :  { %s58_s19 = sshll.u32 %s1016_s18, 4  ;;  %s1017_s1 = smov [#allocation10]   ;;  %s59_s19 = int_to_ptr.vmem [resolvable:$true] %s58_s19 }
  0x35   :  { %s78_s20 = sshll.u32 %s1017_s1, 4  ;;  %s908_s21 = scalar_lea.vmem %s59_s19, 16  ;;  %s79_s20 = int_to_ptr.vmem [resolvable:$true] %s78_s20 }
  0x36   :  { %p909_p6 = scmp.ne.s32.totalorder %s59_s19, %s908_s21  ;;  %s912_s8 = scalar_lea.vmem %s59_s19, 32 }
  0x37   :  { %p913_p7 = scmp.lt.s32.totalorder %s59_s19, %s59_s19  ;;  %p914_p8 = scmp.lt.s32.totalorder %s912_s8, %s908_s21 }
  0x39   :  { %39 = dma.hbm_to_vmem [thread:$0]  %s1248_s30, 16, %s37_s24, [#allocation3]  }
  0x3a   :  { %p915_p9 = por %p914_p8, %p913_p7 }
  0x3c   :  { %p916_p10 = pnand %p915_p9, %p909_p6 }
  0x3e   :  { %919 = shalt.err (!%p916_p10)
}
  0x3f   :  { %61 = dma.hbm_to_vmem [thread:$0]  %s1231_s4, 16, %s59_s19, [#allocation6]  }
  0x40   :  { %s928_s26 = scalar_lea.vmem %s79_s20, 16  ;;  %s932_s24 = scalar_lea.vmem %s79_s20, 32 }
  0x41   :  { %p929_p11 = scmp.ne.s32.totalorder %s79_s20, %s928_s26  ;;  %p933_p12 = scmp.lt.s32.totalorder %s79_s20, %s79_s20 }
  0x42   :  { %p934_p13 = scmp.lt.s32.totalorder %s932_s24, %s928_s26 }
  0x44   :  { %p935_p0 = por %p934_p13, %p933_p12 }
  0x46   :  { %p936_p1 = pnand %p935_p0, %p929_p11 }
  0x48   :  { %939 = shalt.err (!%p936_p1)
}
  0x49   :  { %81 = dma.hbm_to_vmem [thread:$0]  %s1233_s6, 16, %s79_s20, [#allocation9]  }
  0x4a   :  { %s1018_s28 = smov [#allocation13]   ;;  %s1019_s5 = smov [#allocation14]  }
  0x4b   :  { %s100_s29 = sshll.u32 %s1018_s28, 4  ;;  %s111_s27 = sshll.u32 %s1019_s5, 4  ;;  %s101_s29 = int_to_ptr.vmem [resolvable:$true] %s100_s29  ;;  %s112_s27 = int_to_ptr.vmem [resolvable:$true] %s111_s27 }
  0x4c   :  { %s948_s0 = scalar_lea.vmem %s101_s29, 16  ;;  %s952_s4 = scalar_lea.vmem %s101_s29, 32 }
  0x4d   :  { %p949_p2 = scmp.ne.s32.totalorder %s101_s29, %s948_s0  ;;  %p953_p3 = scmp.lt.s32.totalorder %s101_s29, %s101_s29 }
  0x4e   :  { %p954_p4 = scmp.lt.s32.totalorder %s952_s4, %s948_s0 }
  0x50   :  { %p955_p5 = por %p954_p4, %p953_p3 }
  0x52   :  { %p956_p6 = pnand %p955_p5, %p949_p2 }
  0x54   :  { %959 = shalt.err (!%p956_p6)
}
  0x55   :  { %103 = dma.hbm_to_vmem [thread:$0]  %s1236_s9, 16, %s101_s29, [#allocation12]  }
  0x56   :  { %s968_s19 = scalar_lea.vmem %s112_s27, 256  ;;  %p973_p8 = scmp.lt.s32.totalorder %s112_s27, %s112_s27 }
  0x57   :  { %p969_p7 = scmp.ne.s32.totalorder %s112_s27, %s968_s19  ;;  %p974_p9 = scmp.lt.s32.totalorder %s968_s19, %s968_s19 }
  0x59   :  { %p975_p10 = por %p974_p9, %p973_p8 }
  0x5b   :  { %p976_p11 = pnand %p975_p10, %p969_p7 }
  0x5d   :  { %979 = shalt.err (!%p976_p11)
}
  0x5e   :  { %s1020_s6 = smov 64   ;;  %s1021_s1 = smov 4  }
  0x5f   :  { %117 = dma.hbm_to_vmem [thread:$0]  %s1238_s11, 256, %s112_s27, [#allocation15], %s1020_s6, %s1020_s6, %s1021_s1  }
  0x60   :  { %1000 = dma.done.wait [#allocation3], 16  }
  0x61   :  { %1001 = vsyncadd [#allocation3], 4294967280 }
  0x62   :  { %1002 = dma.done.wait [#allocation6], 32  }
  0x63   :  { %1003 = vsyncadd [#allocation6], 4294967264 }
  0x64   :  { %1004 = dma.done.wait [#allocation9], 32  }
  0x65   :  { %1005 = vsyncadd [#allocation9], 4294967264 }
  0x66   :  { %1006 = dma.done.wait [#allocation12], 32  }
  0x67   :  { %1007 = vsyncadd [#allocation12], 4294967264 }
  0x68   :  { %1008 = dma.done.wait [#allocation15], 256  }
  0x69   :  { %1009 = vsyncadd [#allocation15], 4294967040  ;;  %vm158_vm0 = vcmask 261120   ;;  %s1249_s22 = sld [smem:[#allocation23_spill]]  ;;  %v782_v14 = vld [vmem:[%s1230_s3 + $0x8] sm:$0xff]   ;;  %v1022_v15 = vmov 0.0  }
  0x6a   :  { %731 = vmatprep.subr.bf16.mxu0 %v1022_v15  ;;  %vm1023_vm1 = vmmov 0   ;;  %v783_v16 = vld [vmem:[%s1230_s3] sm:$0xff]   ;;  %739 = vmatprep.subr.bf16.mxu1 %v1022_v15  ;;  %v784_v57 = vld [vmem:[%s1234_s7 + $0x8] sm:$0xff]   ;;  %vm524_vm2 = vcmask 523264   ;;  %vm664_vm3 = vcmask 130048  }
  0x6b   :  { %735 = vmatprep.mubr.msk.bf16.mxu0 %vm1023_vm1, %v1022_v15  ;;  %732 = vmatpush3.bf16.msra.mxu0 %v782_v14  ;;  %v688_v23 = vld [vmem:[#allocation2] ss:$0 sm:$0xff]  ;;  %v689_v28 = vld [vmem:[#allocation5] ss:$0 sm:$0xff]  ;;  %v690_v38 = vld [vmem:[#allocation7] ss:$0 sm:$0xff] }
  0x6c   :  { %733 = vmatprep.subr.bf16.mxu0 %v1022_v15  ;;  %743 = vmatprep.mubr.msk.bf16.mxu1 %vm1023_vm1, %v1022_v15  ;;  %v785_v58 = vld [vmem:[%s1234_s7] sm:$0xff]  }
  0x6d   :  { %740 = vmatpush3.bf16.msra.mxu1 %v784_v57 }
  0x6e   :  { %741 = vmatprep.subr.bf16.mxu1 %v1022_v15 }
  0x6f   :  { %v154_v0 = vld [vmem:[%s1249_s22] sm:$0xff]  ;;  %v155_v1 = vld [vmem:[%s1249_s22 + $0x8] sm:$0xff]  ;;  %734 = vmatpush3.bf16.msra.mxu0 %v783_v16  ;;  %s1024_s22 = smov [#allocation16]  }
  0x70   :  { %v159_v2 = vsel %vm158_vm0, %v154_v0, 0.0  ;;  %v162_v3 = vsel %vm158_vm0, %v155_v1, 0.0  ;;  %747 = vmatprep.subr.bf16.mxu0 %v1022_v15  ;;  %s672_s23 = sshll.u32 %s1024_s22, 4  ;;  %s673_s23 = int_to_ptr.vmem [resolvable:$true] %s672_s23 }
  0x71   :  { %160 = vadd.xlane.f32.xlu0 %v159_v2  ;;  %742 = vmatpush3.bf16.msra.mxu1 %v785_v58  ;;  %s980_s26 = scalar_lea.vmem %s673_s23, 256  ;;  %p985_p13 = scmp.lt.s32.totalorder %s673_s23, %s673_s23 }
  0x72   :  { %755 = vmatprep.subr.bf16.mxu1 %v1022_v15  ;;  %p981_p12 = scmp.ne.s32.totalorder %s673_s23, %s980_s26  ;;  %p986_p0 = scmp.lt.s32.totalorder %s980_s26, %s980_s26 }
  0x74   :  { %p987_p1 = por %p986_p0, %p985_p13 }
  0x75   :  { %163 = vadd.xlane.f32.xlu0 %v162_v3 }
  0x76   :  { %p988_p2 = pnand %p987_p1, %p981_p12 }
  0xfa   :  { %v161_v4 = vpop.xlane.xlu0 %160 }
  0xfb   :  { %v166_v5 = vmul.f32 0.03125, %v161_v4 }
  0xfd   :  { %v168_v6 = vsub.f32 %v154_v0, %v166_v5 }
  0xfe   :  { %v164_v7 = vpop.xlane.xlu0 %163 }
  0xff   :  { %v167_v8 = vmul.f32 0.03125, %v164_v7  ;;  %v170_v9 = vmul.f32 %v168_v6, %v168_v6  ;;  %v695_v6 = vld [vmem:[#allocation10] ss:$0 sm:$0xff] }
 0x101   :  { %v169_v10 = vsub.f32 %v155_v1, %v167_v8  ;;  %v172_v11 = vsel %vm158_vm0, %v170_v9, 0.0 }
 0x102   :  { %173 = vadd.xlane.f32.xlu1 %v172_v11 }
 0x103   :  { %v171_v12 = vmul.f32 %v169_v10, %v169_v10 }
 0x105   :  { %v175_v13 = vsel %vm158_vm0, %v171_v12, 0.0 }
 0x106   :  { %176 = vadd.xlane.f32.xlu1 %v175_v13 }
 0x18b   :  { %v174_v17 = vpop.xlane.xlu1 %173 }
 0x18c   :  { %v178_v18 = vmul.f32 0.03125, %v174_v17 }
 0x18e   :  { %v180_v19 = vadd.f32 1e-05, %v178_v18 }
 0x18f   :  { %v177_v20 = vpop.xlane.xlu1 %176 }
 0x190   :  { %792 = vrsqrt.f32 %v180_v19  ;;  %v179_v21 = vmul.f32 0.03125, %v177_v20 }
 0x192   :  { %v181_v22 = vadd.f32 1e-05, %v179_v21 }
 0x194   :  { %794 = vrsqrt.f32 %v181_v22 }
 0x19d   :  { %v793_v24 = vpop.eup %792 }
 0x19e   :  { %v190_v25 = vmul.f32 %v793_v24, %v688_v23 }
 0x1a0   :  { %v194_v26 = vmul.f32 %v190_v25, %v166_v5  ;;  %v192_v32 = vmul.f32 %v190_v25, %v154_v0 }
 0x1a1   :  { %v795_v27 = vpop.eup %794 }
 0x1a2   :  { %v191_v29 = vmul.f32 %v795_v27, %v688_v23  ;;  %v202_v31 = vsub.f32 %v689_v28, %v194_v26  ;;  %v697_v23 = vld [vmem:[#allocation11] ss:$0 sm:$0xff] }
 0x1a4   :  { %v195_v30 = vmul.f32 %v191_v29, %v167_v8  ;;  %v193_v33 = vmul.f32 %v191_v29, %v155_v1  ;;  %v204_v35 = vadd.f32 %v202_v31, %v192_v32  ;;  %v694_v1 = vld [vmem:[#allocation8] ss:$0 sm:$0xff] }
 0x1a6   :  { %v203_v34 = vsub.f32 %v689_v28, %v195_v30 }
 0x1a8   :  { %v205_v36 = vadd.f32 %v203_v34, %v193_v33 }
 0x1aa   :  { %v206_v37 = vpack.c.bf16 %v205_v36, %v204_v35 }
 0x1ac   :  { %736 = vmatmul.mubr.msk.bf16.vlgmr.msra.gmra.mxu0 %vm158_vm0, %v206_v37 }
 0x1ad   :  { %751 = vmatprep.mubr.msk.bf16.mxu0 %vm1023_vm1, %v1022_v15 }
 0x26c   :  { %v267_v39 = vpop.f32.mrf.mxu0 }
 0x26d   :  { %v268_v40 = vadd.f32 %v690_v38, %v267_v39 }
 0x26e   :  { %v737_v41 = vpop.f32.mrf.mxu0 }
 0x26f   :  { %v276_v42 = vsel %vm158_vm0, %v268_v40, 0.0 }
 0x270   :  { %277 = vadd.xlane.f32.xlu0 %v276_v42  ;;  %v270_v43 = vpop.f32.mrf.mxu0  ;;  %v786_v42 = vld [vmem:[#allocation14 + $0x8] sm:$0xff]  }
 0x271   :  { %v271_v44 = vadd.f32 %v690_v38, %v270_v43  ;;  %748 = vmatpush3.bf16.msra.mxu0 %v786_v42  ;;  %v787_v43 = vld [vmem:[#allocation14] sm:$0xff]  }
 0x272   :  { %v738_v45 = vpop.f32.mrf.mxu0  ;;  %749 = vmatprep.subr.bf16.mxu0 %v1022_v15 }
 0x273   :  { %v279_v46 = vsel %vm158_vm0, %v271_v44, 0.0 }
 0x274   :  { %280 = vadd.xlane.f32.xlu1 %v279_v46 }
 0x275   :  { %750 = vmatpush3.bf16.msra.mxu0 %v787_v43 }
 0x2f9   :  { %v278_v47 = vpop.xlane.xlu0 %277 }
 0x2fa   :  { %v282_v48 = vmul.f32 0.03125, %v278_v47 }
 0x2fc   :  { %v284_v49 = vsub.f32 %v268_v40, %v282_v48 }
 0x2fd   :  { %v281_v50 = vpop.xlane.xlu1 %280 }
 0x2fe   :  { %v283_v51 = vmul.f32 0.03125, %v281_v50  ;;  %v286_v52 = vmul.f32 %v284_v49, %v284_v49  ;;  %v701_v50 = vld [vmem:[#allocation13] ss:$0 sm:$0xff] }
 0x300   :  { %v285_v53 = vsub.f32 %v271_v44, %v283_v51  ;;  %v288_v54 = vsel %vm158_vm0, %v286_v52, 0.0 }
 0x301   :  { %289 = vadd.xlane.f32.xlu0 %v288_v54 }
 0x302   :  { %v287_v55 = vmul.f32 %v285_v53, %v285_v53 }
 0x304   :  { %v291_v56 = vsel %vm158_vm0, %v287_v55, 0.0  ;;  %v702_v55 = vld [vmem:[%s1237_s10] ss:$0 sm:$0xff] }
 0x305   :  { %292 = vadd.xlane.f32.xlu1 %v291_v56 }
 0x38a   :  { %v290_v59 = vpop.xlane.xlu0 %289 }
 0x38b   :  { %v294_v60 = vmul.f32 0.03125, %v290_v59 }
 0x38d   :  { %v296_v61 = vadd.f32 1e-05, %v294_v60 }
 0x38e   :  { %v293_v62 = vpop.xlane.xlu1 %292 }
 0x38f   :  { %796 = vrsqrt.f32 %v296_v61  ;;  %v295_v63 = vmul.f32 0.03125, %v293_v62 }
 0x391   :  { %v297_v0 = vadd.f32 1e-05, %v295_v63 }
 0x393   :  { %798 = vrsqrt.f32 %v297_v0 }
 0x39c   :  { %v797_v2 = vpop.eup %796 }
 0x39d   :  { %v306_v3 = vmul.f32 %v797_v2, %v694_v1 }
 0x39f   :  { %v310_v4 = vmul.f32 %v306_v3, %v282_v48  ;;  %v308_v10 = vmul.f32 %v306_v3, %v268_v40 }
 0x3a0   :  { %v799_v5 = vpop.eup %798 }
 0x3a1   :  { %v307_v7 = vmul.f32 %v799_v5, %v694_v1  ;;  %v318_v9 = vsub.f32 %v695_v6, %v310_v4 }
 0x3a3   :  { %v311_v8 = vmul.f32 %v307_v7, %v283_v51  ;;  %v309_v11 = vmul.f32 %v307_v7, %v271_v44  ;;  %v320_v13 = vadd.f32 %v318_v9, %v308_v10  ;;  %v704_v7 = vld [vmem:[%s1239_s12] ss:$0 sm:$0xff] }
 0x3a5   :  { %v319_v12 = vsub.f32 %v695_v6, %v311_v8 }
 0x3a7   :  { %v321_v14 = vadd.f32 %v319_v12, %v309_v11 }
 0x3a9   :  { %v322_v16 = vpack.c.bf16 %v321_v14, %v320_v13 }
 0x3ab   :  { %v696_v17 = vmul.bf16 3216621497, %v322_v16 }
 0x3ad   :  { %800 = vpow.bf16 %v696_v17 }
 0x3bb   :  { %v801_v18 = vpop.eup %800 }
 0x3bc   :  { %v327_v19 = vadd.bf16 1065369472, %v801_v18 }
 0x3be   :  { %802 = vrcp.bf16 %v327_v19 }
 0x3cc   :  { %v803_v20 = vpop.eup %802 }
 0x3cd   :  { %v329_v21 = vmul.bf16 1065369472, %v803_v20 }
 0x3cf   :  { %v330_v22 = vmul.bf16 %v329_v21, %v322_v16 }
 0x3d1   :  { %744 = vmatmul.mubr.msk.bf16.vlgmr.msra.gmra.mxu1 %vm158_vm0, %v330_v22 }
 0x3d2   :  { %763 = vmatprep.mubr.msk.bf16.mxu1 %vm1023_vm1, %v1022_v15 }
 0x491   :  { %v391_v24 = vpop.f32.mrf.mxu1 }
 0x492   :  { %v392_v25 = vadd.f32 %v697_v23, %v391_v24 }
 0x493   :  { %v745_v26 = vpop.f32.mrf.mxu1 }
 0x494   :  { %v400_v27 = vsel %vm158_vm0, %v392_v25, 0.0 }
 0x495   :  { %401 = vadd.xlane.f32.xlu0 %v400_v27  ;;  %v394_v28 = vpop.f32.mrf.mxu1  ;;  %v788_v27 = vld [vmem:[%s1242_s15 + $0x18] sm:$0xff]  }
 0x496   :  { %v395_v29 = vadd.f32 %v697_v23, %v394_v28  ;;  %756 = vmatpush3.bf16.msra.mxu1 %v788_v27  ;;  %v789_v28 = vld [vmem:[%s1242_s15 + $0x10] sm:$0xff]  }
 0x497   :  { %v746_v30 = vpop.f32.mrf.mxu1  ;;  %757 = vmatprep.subr.bf16.mxu1 %v1022_v15 }
 0x498   :  { %v403_v31 = vsel %vm158_vm0, %v395_v29, 0.0  ;;  %v791_v30 = vld [vmem:[%s1242_s15] sm:$0xff]  }
 0x499   :  { %404 = vadd.xlane.f32.xlu1 %v403_v31 }
 0x49a   :  { %758 = vmatpush3.bf16.msra.mxu1 %v789_v28 }
 0x49b   :  { %759 = vmatprep.subr.bf16.mxu1 %v1022_v15 }
 0x51e   :  { %v402_v32 = vpop.xlane.xlu0 %401 }
 0x51f   :  { %v406_v33 = vmul.f32 0.03125, %v402_v32 }
 0x521   :  { %v408_v34 = vsub.f32 %v392_v25, %v406_v33 }
 0x522   :  { %v405_v35 = vpop.xlane.xlu1 %404 }
 0x523   :  { %v407_v36 = vmul.f32 0.03125, %v405_v35  ;;  %v410_v37 = vmul.f32 %v408_v34, %v408_v34 }
 0x525   :  { %v409_v38 = vsub.f32 %v395_v29, %v407_v36  ;;  %v412_v39 = vsel %vm158_vm0, %v410_v37, 0.0  ;;  %v708_v37 = vld [vmem:[%s1240_s13] ss:$0 sm:$0xff] }
 0x526   :  { %413 = vadd.xlane.f32.xlu0 %v412_v39 }
 0x527   :  { %v411_v40 = vmul.f32 %v409_v38, %v409_v38 }
 0x529   :  { %v415_v41 = vsel %vm158_vm0, %v411_v40, 0.0 }
 0x52a   :  { %416 = vadd.xlane.f32.xlu1 %v415_v41 }
 0x5af   :  { %v414_v44 = vpop.xlane.xlu0 %413 }
 0x5b0   :  { %v418_v45 = vmul.f32 0.03125, %v414_v44 }
 0x5b2   :  { %v420_v46 = vadd.f32 1e-05, %v418_v45 }
 0x5b3   :  { %v417_v47 = vpop.xlane.xlu1 %416 }
 0x5b4   :  { %804 = vrsqrt.f32 %v420_v46  ;;  %v419_v48 = vmul.f32 0.03125, %v417_v47 }
 0x5b6   :  { %v421_v49 = vadd.f32 1e-05, %v419_v48 }
 0x5b8   :  { %806 = vrsqrt.f32 %v421_v49 }
 0x5c1   :  { %v805_v51 = vpop.eup %804 }
 0x5c2   :  { %v430_v52 = vmul.f32 %v805_v51, %v701_v50 }
 0x5c4   :  { %v434_v53 = vmul.f32 %v430_v52, %v406_v33  ;;  %v432_v59 = vmul.f32 %v430_v52, %v392_v25 }
 0x5c5   :  { %v807_v54 = vpop.eup %806 }
 0x5c6   :  { %v431_v56 = vmul.f32 %v807_v54, %v701_v50  ;;  %v442_v58 = vsub.f32 %v702_v55, %v434_v53 }
 0x5c8   :  { %v435_v57 = vmul.f32 %v431_v56, %v407_v36  ;;  %v433_v60 = vmul.f32 %v431_v56, %v395_v29  ;;  %v444_v62 = vadd.f32 %v442_v58, %v432_v59  ;;  %v790_v29 = vld [vmem:[%s1242_s15 + $0x8] sm:$0xff]  }
 0x5c9   :  { %760 = vmatpush3.bf16.msra.mxu1 %v790_v29 }
 0x5ca   :  { %v443_v61 = vsub.f32 %v702_v55, %v435_v57  ;;  %761 = vmatprep.subr.bf16.mxu1 %v1022_v15  ;;  %v709_v15 = vld [vmem:[%s1241_s14] ss:$0 sm:$0xff] }
 0x5cb   :  { %v711_v57 = vld [vmem:[%s1243_s16] ss:$0 sm:$0xff] }
 0x5cc   :  { %v445_v63 = vadd.f32 %v443_v61, %v433_v60 }
 0x5cd   :  { %762 = vmatpush3.bf16.msra.mxu1 %v791_v30 }
 0x5ce   :  { %v446_v0 = vpack.c.bf16 %v445_v63, %v444_v62 }
 0x5d0   :  { %v703_v1 = vmul.bf16 3216621497, %v446_v0 }
 0x5d2   :  { %808 = vpow.bf16 %v703_v1 }
 0x5e0   :  { %v809_v2 = vpop.eup %808 }
 0x5e1   :  { %v451_v3 = vadd.bf16 1065369472, %v809_v2 }
 0x5e3   :  { %810 = vrcp.bf16 %v451_v3 }
 0x5f1   :  { %v811_v4 = vpop.eup %810 }
 0x5f2   :  { %v453_v5 = vmul.bf16 1065369472, %v811_v4 }
 0x5f4   :  { %v454_v6 = vmul.bf16 %v453_v5, %v446_v0 }
 0x5f6   :  { %752 = vmatmul.mubr.msk.bf16.vlgmr.msra.gmra.mxu0 %vm158_vm0, %v454_v6 }
 0x6b6   :  { %v515_v8 = vpop.f32.mrf.mxu0 }
 0x6b7   :  { %v516_v9 = vadd.f32 %v704_v7, %v515_v8 }
 0x6b8   :  { %v753_v10 = vpop.f32.mrf.mxu0 }
 0x6b9   :  { %v525_v11 = vsel %vm524_vm2, %v516_v9, 0.0 }
 0x6ba   :  { %526 = vadd.xlane.f32.xlu0 %v525_v11  ;;  %v518_v12 = vpop.f32.mrf.mxu0 }
 0x6bb   :  { %v519_v13 = vadd.f32 %v704_v7, %v518_v12 }
 0x6bc   :  { %v754_v14 = vpop.f32.mrf.mxu0 }
 0x6bd   :  { %v528_v16 = vsel %vm524_vm2, %v519_v13, 0.0 }
 0x6be   :  { %529 = vadd.xlane.f32.xlu1 %v528_v16 }
 0x743   :  { %v527_v17 = vpop.xlane.xlu0 %526 }
 0x744   :  { %v532_v18 = vmul.f32 0.015625, %v527_v17 }
 0x746   :  { %v534_v19 = vsub.f32 %v516_v9, %v532_v18 }
 0x747   :  { %v530_v20 = vpop.xlane.xlu1 %529 }
 0x748   :  { %v533_v21 = vmul.f32 0.015625, %v530_v20  ;;  %v536_v22 = vmul.f32 %v534_v19, %v534_v19 }
 0x74a   :  { %v535_v23 = vsub.f32 %v519_v13, %v533_v21  ;;  %v538_v24 = vsel %vm524_vm2, %v536_v22, 0.0 }
 0x74b   :  { %539 = vadd.xlane.f32.xlu0 %v538_v24 }
 0x74c   :  { %v537_v25 = vmul.f32 %v535_v23, %v535_v23 }
 0x74e   :  { %v541_v26 = vsel %vm524_vm2, %v537_v25, 0.0 }
 0x74f   :  { %542 = vadd.xlane.f32.xlu1 %v541_v26 }
 0x7d4   :  { %v540_v31 = vpop.xlane.xlu0 %539 }
 0x7d5   :  { %v544_v32 = vmul.f32 0.015625, %v540_v31 }
 0x7d7   :  { %v546_v33 = vadd.f32 1e-05, %v544_v32 }
 0x7d8   :  { %v543_v34 = vpop.xlane.xlu1 %542 }
 0x7d9   :  { %812 = vrsqrt.f32 %v546_v33  ;;  %v545_v35 = vmul.f32 0.015625, %v543_v34 }
 0x7db   :  { %v547_v36 = vadd.f32 1e-05, %v545_v35 }
 0x7dd   :  { %814 = vrsqrt.f32 %v547_v36 }
 0x7e6   :  { %v813_v38 = vpop.eup %812 }
 0x7e7   :  { %v556_v39 = vmul.f32 %v813_v38, %v708_v37 }
 0x7e9   :  { %v560_v40 = vmul.f32 %v556_v39, %v532_v18  ;;  %v558_v45 = vmul.f32 %v556_v39, %v516_v9 }
 0x7ea   :  { %v815_v41 = vpop.eup %814 }
 0x7eb   :  { %v557_v42 = vmul.f32 %v815_v41, %v708_v37  ;;  %v568_v44 = vsub.f32 %v709_v15, %v560_v40 }
 0x7ed   :  { %v561_v43 = vmul.f32 %v557_v42, %v533_v21  ;;  %v559_v46 = vmul.f32 %v557_v42, %v519_v13  ;;  %v570_v48 = vadd.f32 %v568_v44, %v558_v45 }
 0x7ef   :  { %v569_v47 = vsub.f32 %v709_v15, %v561_v43 }
 0x7f1   :  { %v571_v49 = vadd.f32 %v569_v47, %v559_v46 }
 0x7f3   :  { %v572_v50 = vpack.c.bf16 %v571_v49, %v570_v48 }
 0x7f5   :  { %v710_v51 = vmul.bf16 3216621497, %v572_v50 }
 0x7f7   :  { %816 = vpow.bf16 %v710_v51 }
 0x805   :  { %v817_v52 = vpop.eup %816 }
 0x806   :  { %v577_v53 = vadd.bf16 1065369472, %v817_v52 }
 0x808   :  { %818 = vrcp.bf16 %v577_v53 }
 0x816   :  { %v819_v54 = vpop.eup %818 }
 0x817   :  { %v579_v55 = vmul.bf16 1065369472, %v819_v54 }
 0x819   :  { %v580_v56 = vmul.bf16 %v579_v55, %v572_v50 }
 0x81b   :  { %764 = vmatmul.mubr.msk.bf16.vlgmr.msra.gmra.mxu1 %vm524_vm2, %v580_v56 }
 0x8db   :  { %v657_v58 = vpop.f32.mrf.mxu1 }
 0x8dc   :  { %v658_v59 = vadd.f32 %v711_v57, %v657_v58 }
 0x8dd   :  { %v765_v60 = vpop.f32.mrf.mxu1 }
 0x8de   :  { %665 = vst.msk [vmem:[#allocation16] sm:$0xff] %vm664_vm3, %v658_v59 }
 0x8df   :  { %v660_v61 = vpop.f32.mrf.mxu1 }
 0x8e0   :  { %v661_v62 = vadd.f32 %v711_v57, %v660_v61 }
 0x8e1   :  { %v766_v63 = vpop.f32.mrf.mxu1 }
 0x8e2   :  { %666 = vst.msk [vmem:[#allocation16 + $0x8] sm:$0xff] %vm664_vm3, %v661_v62 }
 0x8e3   :  { %991 = shalt.err (!%p988_p2)
}
 0x8e4   :  { %s1025_s16 = smov 128   ;;  %s1026_s11 = smov 8  }
 0x8e5   :  { %678 = dma.vmem_to_hbm [thread:$0]  %s673_s23, 256, %s1244_s17, [#allocation4], %s1025_s16, %s1025_s16, %s1026_s11  }
 0x8e6   :  { %1010 = dma.done.wait [#allocation4], 256  }
 0x8e7   :  { %1011 = vsyncadd [#allocation4], 4294967040 }
 0x8e8   :  { %682 = vsyncpa [#allocation3], 1 }
 0x8e9   :  { %683 = vsyncpa [#allocation6], 1 }
 0x8ea   :  { %684 = vsyncpa [#allocation9], 1 }
 0x8eb   :  { %685 = vsyncpa [#allocation12], 1 }
 0x8ec   :  { %686 = vsyncpa [#allocation15], 1 }
 0x8ed   :  { %687 = vsyncpa [#allocation4], 1 }

</bundles_post_ra>
